<compile_context>
chip_gen: v6e
topology: v6e:2x2x1
jax: 0.10.0
libtpu: 0.0.40
codegen_flags: <defaults>
</compile_context>

<pallas_src>
import functools
import math

import numpy as np
import jax
import jax.numpy as jnp
from jax.experimental import pallas as pl
from jax.experimental.pallas import tpu as pltpu

_SQRT2_INV = 1.0 / math.sqrt(2.0)


# ------------------------------ fused kernel -------------------------------

def _make_fused_kernel(heads, planes):
    D = planes
    scale = 1.0 / math.sqrt(D)  # PyTorch scales q by sqrt(dim) == sqrt(planes)

    def kernel(x_ref, pcin_ref, hdin_ref,
               vel_w, vel_b, emb,
               ipc_w, ipc_b, ihd_w, ihd_b,
               q_w, q_b, k_w, k_b, v_w, v_b, hmask,
               ln1_g, ln1_b,
               ff_w1, ff_b1, ff_w2, ff_b2,
               ln2_g, ln2_b,
               hid_w,
               pos_w, pos_b, dir_w, dir_b, pc_w, hd_w,
               feat_ref, opos_ref, odir_ref, opc_ref, ohd_ref):
        f32 = jnp.float32
        bf16 = jnp.bfloat16

        def mm(a, b):  # bf16 MXU operands, f32 accumulation
            return jnp.dot(a.astype(bf16), b.astype(bf16),
                           preferred_element_type=f32)

        def layer_norm(t, g, b):
            mu = jnp.mean(t, axis=-1, keepdims=True)
            tc = t - mu
            var = jnp.mean(tc * tc, axis=-1, keepdims=True)
            return tc * jax.lax.rsqrt(var + 1e-5) * g + b

        def softmax(s):
            s = s - jnp.max(s, axis=-1, keepdims=True)
            p = jnp.exp(s)
            return p * pl.reciprocal(jnp.sum(p, axis=-1, keepdims=True),
                                     approx=True)

        N = x_ref.shape[0]

        # velocity projection + index embedding + init feature  (N, D)
        h = (mm(x_ref[...], vel_w[...]) + vel_b[...]
             + mm(pcin_ref[...], ipc_w[...]) + ipc_b[...]
             + mm(hdin_ref[...], ihd_w[...]) + ihd_b[...]
             + emb[...])

        # ----- attention: all heads, lane-packed head-contiguous (N, D) -----
        q = (mm(h, q_w[...]) + q_b[...]) * scale
        k = mm(h, k_w[...]) + k_b[...]
        v = mm(h, v_w[...]) + v_b[...]

        ao = jnp.zeros((N, D), f32)
        for hh in range(heads):
            m = hmask[hh:hh + 1, :]                       # (1, D) head-column mask
            s = jax.lax.dot_general((q * m).astype(bf16), k.astype(bf16),
                                    (((1,), (1,)), ((), ())),
                                    preferred_element_type=f32)   # (N, N)
            p = softmax(s)
            # contributes only to this head's contiguous output columns
            ao = ao + jnp.dot(p.astype(bf16), (v * m).astype(bf16),
                              preferred_element_type=f32)

        h1 = layer_norm(h + ao, ln1_g[...], ln1_b[...])

        # ----- feed-forward (Linear -> exact GELU -> Linear) -----
        t = mm(h1, ff_w1[...]) + ff_b1[...]
        t = 0.5 * t * (1.0 + jax.lax.erf(t * _SQRT2_INV))
        ff = mm(t, ff_w2[...]) + ff_b2[...]
        h2 = layer_norm(h1 + ff, ln2_g[...], ln2_b[...])

        # ----- output heads (hidden_fc has no bias; dropouts are identity) -----
        feat = mm(h2, hid_w[...])                          # (N, 2D)
        feat_ref[...] = feat.astype(feat_ref.dtype)
        opos_ref[...] = (mm(feat, pos_w[...]) + pos_b[...]).astype(opos_ref.dtype)
        odir_ref[...] = (mm(feat, dir_w[...]) + dir_b[...]).astype(odir_ref.dtype)
        opc_ref[...] = softmax(mm(feat, pc_w[...])).astype(opc_ref.dtype)
        ohd_ref[...] = softmax(mm(feat, hd_w[...])).astype(ohd_ref.dtype)

    return kernel


# ------------------------------ full forward -------------------------------

def loop_attention_forward(params, x, position, direction, *, planes, heads):
    B, N, inplanes = x.shape
    D = planes
    dh = D // heads
    pc_size = position.shape[-1]
    hd_size = direction.shape[-1]
    f32 = jnp.float32

    # Split the fused qkv projection and reorder its output columns from the
    # module's '(d h)' packing to head-contiguous '(h d)'.  Mathematically
    # identical; it makes each head a contiguous lane block inside the kernel
    # and makes the attention output already 'b n (h d)'-packed.
    perm_cols = np.arange(D).reshape(dh, heads).T.reshape(-1)  # dst h*dh+d <- src d*heads+h
    qkv_w, qkv_b = params['qkv_w'], params['qkv_b']
    q_w = qkv_w[:, 0 * D:1 * D][:, perm_cols]
    k_w = qkv_w[:, 1 * D:2 * D][:, perm_cols]
    v_w = qkv_w[:, 2 * D:3 * D][:, perm_cols]
    q_b = qkv_b[:, 0 * D:1 * D][:, perm_cols]
    k_b = qkv_b[:, 1 * D:2 * D][:, perm_cols]
    v_b = qkv_b[:, 2 * D:3 * D][:, perm_cols]

    # head h owns columns [h*dh, (h+1)*dh)
    hmask = jnp.asarray(np.kron(np.eye(heads, dtype=np.float32),
                                np.ones((1, dh), np.float32)))

    kernel = _make_fused_kernel(heads=heads, planes=D)

    def bspec(*shape):  # per-batch block (batch dim squeezed)
        n_trailing = len(shape)
        return pl.BlockSpec((None,) + shape,
                            lambda b: (b,) + (0,) * n_trailing)

    def wspec(arr):  # full-array broadcast block (weights / tables)
        nd = arr.ndim
        return pl.BlockSpec(arr.shape, lambda b: (0,) * nd)

    weights = [params['vel_w'], params['vel_b'], params['index_embed'],
               params['init_pc_w'], params['init_pc_b'],
               params['init_hd_w'], params['init_hd_b'],
               q_w, q_b, k_w, k_b, v_w, v_b, hmask,
               params['ln1_g'], params['ln1_b'],
               params['ff_w1'], params['ff_b1'],
               params['ff_w2'], params['ff_b2'],
               params['ln2_g'], params['ln2_b'],
               params['hid_w'],
               params['pos_w'], params['pos_b'],
               params['dir_w'], params['dir_b'],
               params['pc_w'], params['hd_w']]

    in_specs = ([bspec(N, inplanes), bspec(N, pc_size), bspec(N, hd_size)]
                + [wspec(w) for w in weights])

    out_shape = (jax.ShapeDtypeStruct((B, N, 2 * D), f32),
                 jax.ShapeDtypeStruct((B, N, 2), f32),
                 jax.ShapeDtypeStruct((B, N, 1), f32),
                 jax.ShapeDtypeStruct((B, N, pc_size), f32),
                 jax.ShapeDtypeStruct((B, N, hd_size), f32))
    out_specs = (bspec(N, 2 * D), bspec(N, 2), bspec(N, 1),
                 bspec(N, pc_size), bspec(N, hd_size))

    feat, pos_o, dir_o, pc_o, hd_o = pl.pallas_call(
        kernel,
        out_shape=out_shape,
        grid=(B,),
        in_specs=in_specs,
        out_specs=out_specs,
        compiler_params=pltpu.CompilerParams(
            dimension_semantics=("parallel",)),
    )(x, position, direction, *weights)

    return {'feature': feat, 'position': pos_o, 'direction': dir_o,
            'pc': pc_o, 'hd': hd_o}


# --------------------------- pure-JAX reference ----------------------------

def _gelu_exact(x):
    return 0.5 * x * (1.0 + jax.scipy.special.erf(x * _SQRT2_INV))


def _layernorm(x, g, b, eps=1e-5):
    mu = x.mean(-1, keepdims=True)
    var = ((x - mu) ** 2).mean(-1, keepdims=True)
    return (x - mu) / jnp.sqrt(var + eps) * g + b


def reference_forward(params, x, position, direction, *, planes, heads):
    B, N, _ = x.shape
    D, dh = planes, planes // heads
    init_feat = (position @ params['init_pc_w'] + params['init_pc_b']
                 + direction @ params['init_hd_w'] + params['init_hd_b'])
    h = x @ params['vel_w'] + params['vel_b'] + params['index_embed'][None] + init_feat
    qkv = h @ params['qkv_w'] + params['qkv_b']
    q, k, v = jnp.split(qkv, 3, axis=-1)

    def sh(t):  # 'b n (d h) -> b h n d'
        return jnp.transpose(t.reshape(B, N, dh, heads), (0, 3, 1, 2))

    q, k, v = sh(q), sh(k), sh(v)
    q = q / math.sqrt(D)   # PyTorch scales by sqrt(dim) == sqrt(planes)
    dots = jnp.einsum('bhid,bhjd->bhij', q, k)
    attn = jax.nn.softmax(dots, axis=-1)
    ao = jnp.einsum('bhij,bhjd->bhid', attn, v)
    ao = jnp.transpose(ao, (0, 2, 1, 3)).reshape(B, N, D)   # 'b h n d -> b n (h d)'
    h1 = _layernorm(h + ao, params['ln1_g'], params['ln1_b'])
    ff = _gelu_exact(h1 @ params['ff_w1'] + params['ff_b1']) @ params['ff_w2'] + params['ff_b2']
    h2 = _layernorm(h1 + ff, params['ln2_g'], params['ln2_b'])
    feat = h2 @ params['hid_w']
    return {
        'feature': feat,
        'position': feat @ params['pos_w'] + params['pos_b'],
        'direction': feat @ params['dir_w'] + params['dir_b'],
        'pc': jax.nn.softmax(feat @ params['pc_w'], axis=-1),
        'hd': jax.nn.softmax(feat @ params['hd_w'], axis=-1),
    }


# ------------------------------- parameters --------------------------------

def init_params(key, inplanes, planes, heads, pc_size, hd_size, size):
    ks = jax.random.split(key, 20)
    f32 = jnp.float32
    scale = 0.05

    def w(k, shp):
        return (scale * jax.random.normal(k, shp)).astype(f32)

    return {
        'vel_w': w(ks[0], (inplanes, planes)),      'vel_b': w(ks[1], (1, planes)),
        'index_embed': w(ks[2], (size, planes)),
        'init_pc_w': w(ks[3], (pc_size, planes)),   'init_pc_b': w(ks[4], (1, planes)),
        'init_hd_w': w(ks[5], (hd_size, planes)),   'init_hd_b': w(ks[6], (1, planes)),
        'qkv_w': w(ks[7], (planes, 3 * planes)),    'qkv_b': w(ks[8], (1, 3 * planes)),
        'ln1_g': jnp.ones((1, planes), f32),        'ln1_b': jnp.zeros((1, planes), f32),
        'ff_w1': w(ks[9], (planes, planes)),        'ff_b1': w(ks[10], (1, planes)),
        'ff_w2': w(ks[11], (planes, planes)),       'ff_b2': w(ks[12], (1, planes)),
        'ln2_g': jnp.ones((1, planes), f32),        'ln2_b': jnp.zeros((1, planes), f32),
        'hid_w': w(ks[13], (planes, 2 * planes)),                    # bias=False
        'pos_w': w(ks[14], (2 * planes, 2)),        'pos_b': w(ks[15], (1, 2)),
        'dir_w': w(ks[16], (2 * planes, 1)),        'dir_b': w(ks[17], (1, 1)),
        'pc_w': w(ks[18], (2 * planes, pc_size)),                    # bias=False
        'hd_w': w(ks[19], (2 * planes, hd_size)),                    # bias=False
    }


# ----------------------------------- main -----------------------------------

if __name__ == "__main__":
    B = 2
    inplanes = 4        # x: B N 4
    planes = 32
    heads = 8           # dim_head = planes // heads = 4
    pc_size = 16        # NPC^2 with NPC = 4
    hd_size = 8
    size = 16           # sequence length N must equal self.size

    key = jax.random.PRNGKey(0)
    kx, kp, kd, kw = jax.random.split(key, 4)
    x = jax.random.normal(kx, (B, size, inplanes), jnp.float32)
    position = jax.nn.softmax(jax.random.normal(kp, (B, size, pc_size), jnp.float32), -1)
    direction = jax.nn.softmax(jax.random.normal(kd, (B, size, hd_size), jnp.float32), -1)
    params = init_params(kw, inplanes, planes, heads, pc_size, hd_size, size)

    fwd = jax.jit(functools.partial(loop_attention_forward,
                                    planes=planes, heads=heads))
    out = fwd(params, x, position, direction)
    out = jax.tree_util.tree_map(jax.block_until_ready, out)

    # sanity check against pure-JAX (f32) reference
    ref = reference_forward(params, x, position, direction, planes=planes, heads=heads)
    for name in ('feature', 'position', 'direction', 'pc', 'hd'):
        assert out[name].shape == ref[name].shape, name
        assert jnp.allclose(out[name], ref[name], atol=2e-2, rtol=2e-2), name

    print("KERNEL_OK")
</pallas_src>

<mosaic_0001>
module attributes {stable_mosaic.version = 11 : i64} {
  func.func @kernel(%arg0: i32, %arg1: memref<1x16x4xf32, #tpu.memory_space<vmem>>, %arg2: memref<1x16x16xf32, #tpu.memory_space<vmem>>, %arg3: memref<1x16x8xf32, #tpu.memory_space<vmem>>, %arg4: memref<4x32xf32, #tpu.memory_space<vmem>>, %arg5: memref<1x32xf32, #tpu.memory_space<vmem>>, %arg6: memref<16x32xf32, #tpu.memory_space<vmem>>, %arg7: memref<16x32xf32, #tpu.memory_space<vmem>>, %arg8: memref<1x32xf32, #tpu.memory_space<vmem>>, %arg9: memref<8x32xf32, #tpu.memory_space<vmem>>, %arg10: memref<1x32xf32, #tpu.memory_space<vmem>>, %arg11: memref<32x32xf32, #tpu.memory_space<vmem>>, %arg12: memref<1x32xf32, #tpu.memory_space<vmem>>, %arg13: memref<32x32xf32, #tpu.memory_space<vmem>>, %arg14: memref<1x32xf32, #tpu.memory_space<vmem>>, %arg15: memref<32x32xf32, #tpu.memory_space<vmem>>, %arg16: memref<1x32xf32, #tpu.memory_space<vmem>>, %arg17: memref<8x32xf32, #tpu.memory_space<vmem>>, %arg18: memref<1x32xf32, #tpu.memory_space<vmem>>, %arg19: memref<1x32xf32, #tpu.memory_space<vmem>>, %arg20: memref<32x32xf32, #tpu.memory_space<vmem>>, %arg21: memref<1x32xf32, #tpu.memory_space<vmem>>, %arg22: memref<32x32xf32, #tpu.memory_space<vmem>>, %arg23: memref<1x32xf32, #tpu.memory_space<vmem>>, %arg24: memref<1x32xf32, #tpu.memory_space<vmem>>, %arg25: memref<1x32xf32, #tpu.memory_space<vmem>>, %arg26: memref<32x64xf32, #tpu.memory_space<vmem>>, %arg27: memref<64x2xf32, #tpu.memory_space<vmem>>, %arg28: memref<1x2xf32, #tpu.memory_space<vmem>>, %arg29: memref<64x1xf32, #tpu.memory_space<vmem>>, %arg30: memref<1x1xf32, #tpu.memory_space<vmem>>, %arg31: memref<64x16xf32, #tpu.memory_space<vmem>>, %arg32: memref<64x8xf32, #tpu.memory_space<vmem>>, %arg33: memref<1x16x64xf32, #tpu.memory_space<vmem>>, %arg34: memref<1x16x2xf32, #tpu.memory_space<vmem>>, %arg35: memref<1x16x1xf32, #tpu.memory_space<vmem>>, %arg36: memref<1x16x16xf32, #tpu.memory_space<vmem>>, %arg37: memref<1x16x8xf32, #tpu.memory_space<vmem>>) attributes {dimension_semantics = [#tpu.dimension_semantics<parallel>], iteration_bounds = array<i64: 2>, scalar_prefetch = 0 : i64, scratch_operands = 0 : i64, tpu.core_type = #tpu.core_type<tc>, window_params = [{transform_indices = @transform_0, window_bounds = array<i64: 1, 16, 4>}, {transform_indices = @transform_1, window_bounds = array<i64: 1, 16, 16>}, {transform_indices = @transform_2, window_bounds = array<i64: 1, 16, 8>}, {pipeline_mode = #tpu.pipeline_mode<synchronous>, transform_indices = @transform_3, window_bounds = array<i64: 4, 32>}, {pipeline_mode = #tpu.pipeline_mode<synchronous>, transform_indices = @transform_4, window_bounds = array<i64: 1, 32>}, {pipeline_mode = #tpu.pipeline_mode<synchronous>, transform_indices = @transform_5, window_bounds = array<i64: 16, 32>}, {pipeline_mode = #tpu.pipeline_mode<synchronous>, transform_indices = @transform_6, window_bounds = array<i64: 16, 32>}, {pipeline_mode = #tpu.pipeline_mode<synchronous>, transform_indices = @transform_7, window_bounds = array<i64: 1, 32>}, {pipeline_mode = #tpu.pipeline_mode<synchronous>, transform_indices = @transform_8, window_bounds = array<i64: 8, 32>}, {pipeline_mode = #tpu.pipeline_mode<synchronous>, transform_indices = @transform_9, window_bounds = array<i64: 1, 32>}, {pipeline_mode = #tpu.pipeline_mode<synchronous>, transform_indices = @transform_10, window_bounds = array<i64: 32, 32>}, {pipeline_mode = #tpu.pipeline_mode<synchronous>, transform_indices = @transform_11, window_bounds = array<i64: 1, 32>}, {pipeline_mode = #tpu.pipeline_mode<synchronous>, transform_indices = @transform_12, window_bounds = array<i64: 32, 32>}, {pipeline_mode = #tpu.pipeline_mode<synchronous>, transform_indices = @transform_13, window_bounds = array<i64: 1, 32>}, {pipeline_mode = #tpu.pipeline_mode<synchronous>, transform_indices = @transform_14, window_bounds = array<i64: 32, 32>}, {pipeline_mode = #tpu.pipeline_mode<synchronous>, transform_indices = @transform_15, window_bounds = array<i64: 1, 32>}, {pipeline_mode = #tpu.pipeline_mode<synchronous>, transform_indices = @transform_16, window_bounds = array<i64: 8, 32>}, {pipeline_mode = #tpu.pipeline_mode<synchronous>, transform_indices = @transform_17, window_bounds = array<i64: 1, 32>}, {pipeline_mode = #tpu.pipeline_mode<synchronous>, transform_indices = @transform_18, window_bounds = array<i64: 1, 32>}, {pipeline_mode = #tpu.pipeline_mode<synchronous>, transform_indices = @transform_19, window_bounds = array<i64: 32, 32>}, {pipeline_mode = #tpu.pipeline_mode<synchronous>, transform_indices = @transform_20, window_bounds = array<i64: 1, 32>}, {pipeline_mode = #tpu.pipeline_mode<synchronous>, transform_indices = @transform_21, window_bounds = array<i64: 32, 32>}, {pipeline_mode = #tpu.pipeline_mode<synchronous>, transform_indices = @transform_22, window_bounds = array<i64: 1, 32>}, {pipeline_mode = #tpu.pipeline_mode<synchronous>, transform_indices = @transform_23, window_bounds = array<i64: 1, 32>}, {pipeline_mode = #tpu.pipeline_mode<synchronous>, transform_indices = @transform_24, window_bounds = array<i64: 1, 32>}, {pipeline_mode = #tpu.pipeline_mode<synchronous>, transform_indices = @transform_25, window_bounds = array<i64: 32, 64>}, {pipeline_mode = #tpu.pipeline_mode<synchronous>, transform_indices = @transform_26, window_bounds = array<i64: 64, 2>}, {pipeline_mode = #tpu.pipeline_mode<synchronous>, transform_indices = @transform_27, window_bounds = array<i64: 1, 2>}, {pipeline_mode = #tpu.pipeline_mode<synchronous>, transform_indices = @transform_28, window_bounds = array<i64: 64, 1>}, {pipeline_mode = #tpu.pipeline_mode<synchronous>, transform_indices = @transform_29, window_bounds = array<i64: 1, 1>}, {pipeline_mode = #tpu.pipeline_mode<synchronous>, transform_indices = @transform_30, window_bounds = array<i64: 64, 16>}, {pipeline_mode = #tpu.pipeline_mode<synchronous>, transform_indices = @transform_31, window_bounds = array<i64: 64, 8>}, {transform_indices = @transform_32, window_bounds = array<i64: 1, 16, 64>}, {transform_indices = @transform_33, window_bounds = array<i64: 1, 16, 2>}, {transform_indices = @transform_34, window_bounds = array<i64: 1, 16, 1>}, {transform_indices = @transform_35, window_bounds = array<i64: 1, 16, 16>}, {transform_indices = @transform_36, window_bounds = array<i64: 1, 16, 8>}]} {
    %c0 = arith.constant 0 : index
    %c0_0 = arith.constant 0 : index
    %c0_1 = arith.constant 0 : index
    %0 = vector.load %arg1[%c0, %c0_0, %c0_1] : memref<1x16x4xf32, #tpu.memory_space<vmem>>, vector<1x16x4xf32>
    %1 = vector.shape_cast %0 : vector<1x16x4xf32> to vector<16x4xf32>
    %c0_2 = arith.constant 0 : index
    %c0_3 = arith.constant 0 : index
    %2 = vector.load %arg4[%c0_2, %c0_3] : memref<4x32xf32, #tpu.memory_space<vmem>>, vector<4x32xf32>
    %3 = arith.truncf %1 : vector<16x4xf32> to vector<16x4xbf16>
    %4 = arith.truncf %2 : vector<4x32xf32> to vector<4x32xbf16>
    %cst = arith.constant dense<0.000000e+00> : vector<16x32xf32>
    %5 = tpu.matmul %3, %4, %cst {dimension_numbers = #tpu.dot_dimension_numbers<[1], [0], [0], [1], [0, 0, 1, 1], [], []>} : vector<16x4xbf16>, vector<4x32xbf16>, vector<16x32xf32> -> vector<16x32xf32>
    %c0_4 = arith.constant 0 : index
    %c0_5 = arith.constant 0 : index
    %6 = vector.load %arg5[%c0_4, %c0_5] : memref<1x32xf32, #tpu.memory_space<vmem>>, vector<1x32xf32>
    %7 = vector.broadcast %6 : vector<1x32xf32> to vector<16x32xf32>
    %8 = arith.addf %5, %7 : vector<16x32xf32>
    %c0_6 = arith.constant 0 : index
    %c0_7 = arith.constant 0 : index
    %c0_8 = arith.constant 0 : index
    %9 = vector.load %arg2[%c0_6, %c0_7, %c0_8] : memref<1x16x16xf32, #tpu.memory_space<vmem>>, vector<1x16x16xf32>
    %10 = vector.shape_cast %9 : vector<1x16x16xf32> to vector<16x16xf32>
    %c0_9 = arith.constant 0 : index
    %c0_10 = arith.constant 0 : index
    %11 = vector.load %arg7[%c0_9, %c0_10] : memref<16x32xf32, #tpu.memory_space<vmem>>, vector<16x32xf32>
    %12 = arith.truncf %10 : vector<16x16xf32> to vector<16x16xbf16>
    %13 = arith.truncf %11 : vector<16x32xf32> to vector<16x32xbf16>
    %cst_11 = arith.constant dense<0.000000e+00> : vector<16x32xf32>
    %14 = tpu.matmul %12, %13, %cst_11 {dimension_numbers = #tpu.dot_dimension_numbers<[1], [0], [0], [1], [0, 0, 1, 1], [], []>} : vector<16x16xbf16>, vector<16x32xbf16>, vector<16x32xf32> -> vector<16x32xf32>
    %15 = arith.addf %8, %14 : vector<16x32xf32>
    %c0_12 = arith.constant 0 : index
    %c0_13 = arith.constant 0 : index
    %16 = vector.load %arg8[%c0_12, %c0_13] : memref<1x32xf32, #tpu.memory_space<vmem>>, vector<1x32xf32>
    %17 = vector.broadcast %16 : vector<1x32xf32> to vector<16x32xf32>
    %18 = arith.addf %15, %17 : vector<16x32xf32>
    %c0_14 = arith.constant 0 : index
    %c0_15 = arith.constant 0 : index
    %c0_16 = arith.constant 0 : index
    %19 = vector.load %arg3[%c0_14, %c0_15, %c0_16] : memref<1x16x8xf32, #tpu.memory_space<vmem>>, vector<1x16x8xf32>
    %20 = vector.shape_cast %19 : vector<1x16x8xf32> to vector<16x8xf32>
    %c0_17 = arith.constant 0 : index
    %c0_18 = arith.constant 0 : index
    %21 = vector.load %arg9[%c0_17, %c0_18] : memref<8x32xf32, #tpu.memory_space<vmem>>, vector<8x32xf32>
    %22 = arith.truncf %20 : vector<16x8xf32> to vector<16x8xbf16>
    %23 = arith.truncf %21 : vector<8x32xf32> to vector<8x32xbf16>
    %cst_19 = arith.constant dense<0.000000e+00> : vector<16x32xf32>
    %24 = tpu.matmul %22, %23, %cst_19 {dimension_numbers = #tpu.dot_dimension_numbers<[1], [0], [0], [1], [0, 0, 1, 1], [], []>} : vector<16x8xbf16>, vector<8x32xbf16>, vector<16x32xf32> -> vector<16x32xf32>
    %25 = arith.addf %18, %24 : vector<16x32xf32>
    %c0_20 = arith.constant 0 : index
    %c0_21 = arith.constant 0 : index
    %26 = vector.load %arg10[%c0_20, %c0_21] : memref<1x32xf32, #tpu.memory_space<vmem>>, vector<1x32xf32>
    %27 = vector.broadcast %26 : vector<1x32xf32> to vector<16x32xf32>
    %28 = arith.addf %25, %27 : vector<16x32xf32>
    %c0_22 = arith.constant 0 : index
    %c0_23 = arith.constant 0 : index
    %29 = vector.load %arg6[%c0_22, %c0_23] : memref<16x32xf32, #tpu.memory_space<vmem>>, vector<16x32xf32>
    %30 = arith.addf %28, %29 : vector<16x32xf32>
    %c0_24 = arith.constant 0 : index
    %c0_25 = arith.constant 0 : index
    %31 = vector.load %arg11[%c0_24, %c0_25] : memref<32x32xf32, #tpu.memory_space<vmem>>, vector<32x32xf32>
    %32 = arith.truncf %30 : vector<16x32xf32> to vector<16x32xbf16>
    %33 = arith.truncf %31 : vector<32x32xf32> to vector<32x32xbf16>
    %cst_26 = arith.constant dense<0.000000e+00> : vector<16x32xf32>
    %34 = tpu.matmul %32, %33, %cst_26 {dimension_numbers = #tpu.dot_dimension_numbers<[1], [0], [0], [1], [0, 0, 1, 1], [], []>} : vector<16x32xbf16>, vector<32x32xbf16>, vector<16x32xf32> -> vector<16x32xf32>
    %c0_27 = arith.constant 0 : index
    %c0_28 = arith.constant 0 : index
    %35 = vector.load %arg12[%c0_27, %c0_28] : memref<1x32xf32, #tpu.memory_space<vmem>>, vector<1x32xf32>
    %36 = vector.broadcast %35 : vector<1x32xf32> to vector<16x32xf32>
    %37 = arith.addf %34, %36 : vector<16x32xf32>
    %cst_29 = arith.constant 0.176776692 : f32
    %38 = vector.broadcast %cst_29 : f32 to vector<16x32xf32>
    %39 = arith.mulf %37, %38 : vector<16x32xf32>
    %c0_30 = arith.constant 0 : index
    %c0_31 = arith.constant 0 : index
    %40 = vector.load %arg13[%c0_30, %c0_31] : memref<32x32xf32, #tpu.memory_space<vmem>>, vector<32x32xf32>
    %41 = arith.truncf %30 : vector<16x32xf32> to vector<16x32xbf16>
    %42 = arith.truncf %40 : vector<32x32xf32> to vector<32x32xbf16>
    %cst_32 = arith.constant dense<0.000000e+00> : vector<16x32xf32>
    %43 = tpu.matmul %41, %42, %cst_32 {dimension_numbers = #tpu.dot_dimension_numbers<[1], [0], [0], [1], [0, 0, 1, 1], [], []>} : vector<16x32xbf16>, vector<32x32xbf16>, vector<16x32xf32> -> vector<16x32xf32>
    %c0_33 = arith.constant 0 : index
    %c0_34 = arith.constant 0 : index
    %44 = vector.load %arg14[%c0_33, %c0_34] : memref<1x32xf32, #tpu.memory_space<vmem>>, vector<1x32xf32>
    %45 = vector.broadcast %44 : vector<1x32xf32> to vector<16x32xf32>
    %46 = arith.addf %43, %45 : vector<16x32xf32>
    %c0_35 = arith.constant 0 : index
    %c0_36 = arith.constant 0 : index
    %47 = vector.load %arg15[%c0_35, %c0_36] : memref<32x32xf32, #tpu.memory_space<vmem>>, vector<32x32xf32>
    %48 = arith.truncf %30 : vector<16x32xf32> to vector<16x32xbf16>
    %49 = arith.truncf %47 : vector<32x32xf32> to vector<32x32xbf16>
    %cst_37 = arith.constant dense<0.000000e+00> : vector<16x32xf32>
    %50 = tpu.matmul %48, %49, %cst_37 {dimension_numbers = #tpu.dot_dimension_numbers<[1], [0], [0], [1], [0, 0, 1, 1], [], []>} : vector<16x32xbf16>, vector<32x32xbf16>, vector<16x32xf32> -> vector<16x32xf32>
    %c0_38 = arith.constant 0 : index
    %c0_39 = arith.constant 0 : index
    %51 = vector.load %arg16[%c0_38, %c0_39] : memref<1x32xf32, #tpu.memory_space<vmem>>, vector<1x32xf32>
    %52 = vector.broadcast %51 : vector<1x32xf32> to vector<16x32xf32>
    %53 = arith.addf %50, %52 : vector<16x32xf32>
    %cst_40 = arith.constant 0.000000e+00 : f32
    %54 = vector.broadcast %cst_40 : f32 to vector<16x32xf32>
    %c0_41 = arith.constant 0 : index
    %c0_42 = arith.constant 0 : index
    %55 = vector.load %arg17[%c0_41, %c0_42] : memref<8x32xf32, #tpu.memory_space<vmem>>, vector<1x32xf32>
    %56 = vector.broadcast %55 : vector<1x32xf32> to vector<16x32xf32>
    %57 = arith.mulf %39, %56 : vector<16x32xf32>
    %58 = arith.truncf %57 : vector<16x32xf32> to vector<16x32xbf16>
    %59 = arith.truncf %46 : vector<16x32xf32> to vector<16x32xbf16>
    %cst_43 = arith.constant dense<0.000000e+00> : vector<16x16xf32>
    %60 = tpu.matmul %58, %59, %cst_43 {dimension_numbers = #tpu.dot_dimension_numbers<[1], [1], [0], [0], [0, 0, 1, 0], [], []>} : vector<16x32xbf16>, vector<16x32xbf16>, vector<16x16xf32> -> vector<16x16xf32>
    %cst_44 = arith.constant dense<0xFF800000> : vector<16xf32>
    %61 = vector.multi_reduction <maximumf>, %60, %cst_44 [1] : vector<16x16xf32> to vector<16xf32>
    %62 = vector.shape_cast %61 : vector<16xf32> to vector<16x1xf32>
    %63 = vector.broadcast %62 : vector<16x1xf32> to vector<16x16xf32>
    %64 = arith.subf %60, %63 : vector<16x16xf32>
    %65 = math.exp %64 : vector<16x16xf32>
    %cst_45 = arith.constant dense<0.000000e+00> : vector<16xf32>
    %66 = vector.multi_reduction <add>, %65, %cst_45 [1] : vector<16x16xf32> to vector<16xf32>
    %67 = vector.shape_cast %66 : vector<16xf32> to vector<16x1xf32>
    %68 = tpu.reciprocal %67 {approx = true} : vector<16x1xf32> -> vector<16x1xf32>
    %69 = vector.broadcast %68 : vector<16x1xf32> to vector<16x16xf32>
    %70 = arith.mulf %65, %69 : vector<16x16xf32>
    %71 = arith.truncf %70 : vector<16x16xf32> to vector<16x16xbf16>
    %72 = vector.broadcast %55 : vector<1x32xf32> to vector<16x32xf32>
    %73 = arith.mulf %53, %72 : vector<16x32xf32>
    %74 = arith.truncf %73 : vector<16x32xf32> to vector<16x32xbf16>
    %cst_46 = arith.constant dense<0.000000e+00> : vector<16x32xf32>
    %75 = tpu.matmul %71, %74, %cst_46 {dimension_numbers = #tpu.dot_dimension_numbers<[1], [0], [0], [1], [0, 0, 1, 1], [], []>} : vector<16x16xbf16>, vector<16x32xbf16>, vector<16x32xf32> -> vector<16x32xf32>
    %76 = arith.addf %54, %75 : vector<16x32xf32>
    %c1 = arith.constant 1 : index
    %c0_47 = arith.constant 0 : index
    %77 = vector.load %arg17[%c1, %c0_47] : memref<8x32xf32, #tpu.memory_space<vmem>>, vector<1x32xf32>
    %78 = vector.broadcast %77 : vector<1x32xf32> to vector<16x32xf32>
    %79 = arith.mulf %39, %78 : vector<16x32xf32>
    %80 = arith.truncf %79 : vector<16x32xf32> to vector<16x32xbf16>
    %81 = arith.truncf %46 : vector<16x32xf32> to vector<16x32xbf16>
    %cst_48 = arith.constant dense<0.000000e+00> : vector<16x16xf32>
    %82 = tpu.matmul %80, %81, %cst_48 {dimension_numbers = #tpu.dot_dimension_numbers<[1], [1], [0], [0], [0, 0, 1, 0], [], []>} : vector<16x32xbf16>, vector<16x32xbf16>, vector<16x16xf32> -> vector<16x16xf32>
    %cst_49 = arith.constant dense<0xFF800000> : vector<16xf32>
    %83 = vector.multi_reduction <maximumf>, %82, %cst_49 [1] : vector<16x16xf32> to vector<16xf32>
    %84 = vector.shape_cast %83 : vector<16xf32> to vector<16x1xf32>
    %85 = vector.broadcast %84 : vector<16x1xf32> to vector<16x16xf32>
    %86 = arith.subf %82, %85 : vector<16x16xf32>
    %87 = math.exp %86 : vector<16x16xf32>
    %cst_50 = arith.constant dense<0.000000e+00> : vector<16xf32>
    %88 = vector.multi_reduction <add>, %87, %cst_50 [1] : vector<16x16xf32> to vector<16xf32>
    %89 = vector.shape_cast %88 : vector<16xf32> to vector<16x1xf32>
    %90 = tpu.reciprocal %89 {approx = true} : vector<16x1xf32> -> vector<16x1xf32>
    %91 = vector.broadcast %90 : vector<16x1xf32> to vector<16x16xf32>
    %92 = arith.mulf %87, %91 : vector<16x16xf32>
    %93 = arith.truncf %92 : vector<16x16xf32> to vector<16x16xbf16>
    %94 = vector.broadcast %77 : vector<1x32xf32> to vector<16x32xf32>
    %95 = arith.mulf %53, %94 : vector<16x32xf32>
    %96 = arith.truncf %95 : vector<16x32xf32> to vector<16x32xbf16>
    %cst_51 = arith.constant dense<0.000000e+00> : vector<16x32xf32>
    %97 = tpu.matmul %93, %96, %cst_51 {dimension_numbers = #tpu.dot_dimension_numbers<[1], [0], [0], [1], [0, 0, 1, 1], [], []>} : vector<16x16xbf16>, vector<16x32xbf16>, vector<16x32xf32> -> vector<16x32xf32>
    %98 = arith.addf %76, %97 : vector<16x32xf32>
    %c2 = arith.constant 2 : index
    %c0_52 = arith.constant 0 : index
    %99 = vector.load %arg17[%c2, %c0_52] : memref<8x32xf32, #tpu.memory_space<vmem>>, vector<1x32xf32>
    %100 = vector.broadcast %99 : vector<1x32xf32> to vector<16x32xf32>
    %101 = arith.mulf %39, %100 : vector<16x32xf32>
    %102 = arith.truncf %101 : vector<16x32xf32> to vector<16x32xbf16>
    %103 = arith.truncf %46 : vector<16x32xf32> to vector<16x32xbf16>
    %cst_53 = arith.constant dense<0.000000e+00> : vector<16x16xf32>
    %104 = tpu.matmul %102, %103, %cst_53 {dimension_numbers = #tpu.dot_dimension_numbers<[1], [1], [0], [0], [0, 0, 1, 0], [], []>} : vector<16x32xbf16>, vector<16x32xbf16>, vector<16x16xf32> -> vector<16x16xf32>
    %cst_54 = arith.constant dense<0xFF800000> : vector<16xf32>
    %105 = vector.multi_reduction <maximumf>, %104, %cst_54 [1] : vector<16x16xf32> to vector<16xf32>
    %106 = vector.shape_cast %105 : vector<16xf32> to vector<16x1xf32>
    %107 = vector.broadcast %106 : vector<16x1xf32> to vector<16x16xf32>
    %108 = arith.subf %104, %107 : vector<16x16xf32>
    %109 = math.exp %108 : vector<16x16xf32>
    %cst_55 = arith.constant dense<0.000000e+00> : vector<16xf32>
    %110 = vector.multi_reduction <add>, %109, %cst_55 [1] : vector<16x16xf32> to vector<16xf32>
    %111 = vector.shape_cast %110 : vector<16xf32> to vector<16x1xf32>
    %112 = tpu.reciprocal %111 {approx = true} : vector<16x1xf32> -> vector<16x1xf32>
    %113 = vector.broadcast %112 : vector<16x1xf32> to vector<16x16xf32>
    %114 = arith.mulf %109, %113 : vector<16x16xf32>
    %115 = arith.truncf %114 : vector<16x16xf32> to vector<16x16xbf16>
    %116 = vector.broadcast %99 : vector<1x32xf32> to vector<16x32xf32>
    %117 = arith.mulf %53, %116 : vector<16x32xf32>
    %118 = arith.truncf %117 : vector<16x32xf32> to vector<16x32xbf16>
    %cst_56 = arith.constant dense<0.000000e+00> : vector<16x32xf32>
    %119 = tpu.matmul %115, %118, %cst_56 {dimension_numbers = #tpu.dot_dimension_numbers<[1], [0], [0], [1], [0, 0, 1, 1], [], []>} : vector<16x16xbf16>, vector<16x32xbf16>, vector<16x32xf32> -> vector<16x32xf32>
    %120 = arith.addf %98, %119 : vector<16x32xf32>
    %c3 = arith.constant 3 : index
    %c0_57 = arith.constant 0 : index
    %121 = vector.load %arg17[%c3, %c0_57] : memref<8x32xf32, #tpu.memory_space<vmem>>, vector<1x32xf32>
    %122 = vector.broadcast %121 : vector<1x32xf32> to vector<16x32xf32>
    %123 = arith.mulf %39, %122 : vector<16x32xf32>
    %124 = arith.truncf %123 : vector<16x32xf32> to vector<16x32xbf16>
    %125 = arith.truncf %46 : vector<16x32xf32> to vector<16x32xbf16>
    %cst_58 = arith.constant dense<0.000000e+00> : vector<16x16xf32>
    %126 = tpu.matmul %124, %125, %cst_58 {dimension_numbers = #tpu.dot_dimension_numbers<[1], [1], [0], [0], [0, 0, 1, 0], [], []>} : vector<16x32xbf16>, vector<16x32xbf16>, vector<16x16xf32> -> vector<16x16xf32>
    %cst_59 = arith.constant dense<0xFF800000> : vector<16xf32>
    %127 = vector.multi_reduction <maximumf>, %126, %cst_59 [1] : vector<16x16xf32> to vector<16xf32>
    %128 = vector.shape_cast %127 : vector<16xf32> to vector<16x1xf32>
    %129 = vector.broadcast %128 : vector<16x1xf32> to vector<16x16xf32>
    %130 = arith.subf %126, %129 : vector<16x16xf32>
    %131 = math.exp %130 : vector<16x16xf32>
    %cst_60 = arith.constant dense<0.000000e+00> : vector<16xf32>
    %132 = vector.multi_reduction <add>, %131, %cst_60 [1] : vector<16x16xf32> to vector<16xf32>
    %133 = vector.shape_cast %132 : vector<16xf32> to vector<16x1xf32>
    %134 = tpu.reciprocal %133 {approx = true} : vector<16x1xf32> -> vector<16x1xf32>
    %135 = vector.broadcast %134 : vector<16x1xf32> to vector<16x16xf32>
    %136 = arith.mulf %131, %135 : vector<16x16xf32>
    %137 = arith.truncf %136 : vector<16x16xf32> to vector<16x16xbf16>
    %138 = vector.broadcast %121 : vector<1x32xf32> to vector<16x32xf32>
    %139 = arith.mulf %53, %138 : vector<16x32xf32>
    %140 = arith.truncf %139 : vector<16x32xf32> to vector<16x32xbf16>
    %cst_61 = arith.constant dense<0.000000e+00> : vector<16x32xf32>
    %141 = tpu.matmul %137, %140, %cst_61 {dimension_numbers = #tpu.dot_dimension_numbers<[1], [0], [0], [1], [0, 0, 1, 1], [], []>} : vector<16x16xbf16>, vector<16x32xbf16>, vector<16x32xf32> -> vector<16x32xf32>
    %142 = arith.addf %120, %141 : vector<16x32xf32>
    %c4 = arith.constant 4 : index
    %c0_62 = arith.constant 0 : index
    %143 = vector.load %arg17[%c4, %c0_62] : memref<8x32xf32, #tpu.memory_space<vmem>>, vector<1x32xf32>
    %144 = vector.broadcast %143 : vector<1x32xf32> to vector<16x32xf32>
    %145 = arith.mulf %39, %144 : vector<16x32xf32>
    %146 = arith.truncf %145 : vector<16x32xf32> to vector<16x32xbf16>
    %147 = arith.truncf %46 : vector<16x32xf32> to vector<16x32xbf16>
    %cst_63 = arith.constant dense<0.000000e+00> : vector<16x16xf32>
    %148 = tpu.matmul %146, %147, %cst_63 {dimension_numbers = #tpu.dot_dimension_numbers<[1], [1], [0], [0], [0, 0, 1, 0], [], []>} : vector<16x32xbf16>, vector<16x32xbf16>, vector<16x16xf32> -> vector<16x16xf32>
    %cst_64 = arith.constant dense<0xFF800000> : vector<16xf32>
    %149 = vector.multi_reduction <maximumf>, %148, %cst_64 [1] : vector<16x16xf32> to vector<16xf32>
    %150 = vector.shape_cast %149 : vector<16xf32> to vector<16x1xf32>
    %151 = vector.broadcast %150 : vector<16x1xf32> to vector<16x16xf32>
    %152 = arith.subf %148, %151 : vector<16x16xf32>
    %153 = math.exp %152 : vector<16x16xf32>
    %cst_65 = arith.constant dense<0.000000e+00> : vector<16xf32>
    %154 = vector.multi_reduction <add>, %153, %cst_65 [1] : vector<16x16xf32> to vector<16xf32>
    %155 = vector.shape_cast %154 : vector<16xf32> to vector<16x1xf32>
    %156 = tpu.reciprocal %155 {approx = true} : vector<16x1xf32> -> vector<16x1xf32>
    %157 = vector.broadcast %156 : vector<16x1xf32> to vector<16x16xf32>
    %158 = arith.mulf %153, %157 : vector<16x16xf32>
    %159 = arith.truncf %158 : vector<16x16xf32> to vector<16x16xbf16>
    %160 = vector.broadcast %143 : vector<1x32xf32> to vector<16x32xf32>
    %161 = arith.mulf %53, %160 : vector<16x32xf32>
    %162 = arith.truncf %161 : vector<16x32xf32> to vector<16x32xbf16>
    %cst_66 = arith.constant dense<0.000000e+00> : vector<16x32xf32>
    %163 = tpu.matmul %159, %162, %cst_66 {dimension_numbers = #tpu.dot_dimension_numbers<[1], [0], [0], [1], [0, 0, 1, 1], [], []>} : vector<16x16xbf16>, vector<16x32xbf16>, vector<16x32xf32> -> vector<16x32xf32>
    %164 = arith.addf %142, %163 : vector<16x32xf32>
    %c5 = arith.constant 5 : index
    %c0_67 = arith.constant 0 : index
    %165 = vector.load %arg17[%c5, %c0_67] : memref<8x32xf32, #tpu.memory_space<vmem>>, vector<1x32xf32>
    %166 = vector.broadcast %165 : vector<1x32xf32> to vector<16x32xf32>
    %167 = arith.mulf %39, %166 : vector<16x32xf32>
    %168 = arith.truncf %167 : vector<16x32xf32> to vector<16x32xbf16>
    %169 = arith.truncf %46 : vector<16x32xf32> to vector<16x32xbf16>
    %cst_68 = arith.constant dense<0.000000e+00> : vector<16x16xf32>
    %170 = tpu.matmul %168, %169, %cst_68 {dimension_numbers = #tpu.dot_dimension_numbers<[1], [1], [0], [0], [0, 0, 1, 0], [], []>} : vector<16x32xbf16>, vector<16x32xbf16>, vector<16x16xf32> -> vector<16x16xf32>
    %cst_69 = arith.constant dense<0xFF800000> : vector<16xf32>
    %171 = vector.multi_reduction <maximumf>, %170, %cst_69 [1] : vector<16x16xf32> to vector<16xf32>
    %172 = vector.shape_cast %171 : vector<16xf32> to vector<16x1xf32>
    %173 = vector.broadcast %172 : vector<16x1xf32> to vector<16x16xf32>
    %174 = arith.subf %170, %173 : vector<16x16xf32>
    %175 = math.exp %174 : vector<16x16xf32>
    %cst_70 = arith.constant dense<0.000000e+00> : vector<16xf32>
    %176 = vector.multi_reduction <add>, %175, %cst_70 [1] : vector<16x16xf32> to vector<16xf32>
    %177 = vector.shape_cast %176 : vector<16xf32> to vector<16x1xf32>
    %178 = tpu.reciprocal %177 {approx = true} : vector<16x1xf32> -> vector<16x1xf32>
    %179 = vector.broadcast %178 : vector<16x1xf32> to vector<16x16xf32>
    %180 = arith.mulf %175, %179 : vector<16x16xf32>
    %181 = arith.truncf %180 : vector<16x16xf32> to vector<16x16xbf16>
    %182 = vector.broadcast %165 : vector<1x32xf32> to vector<16x32xf32>
    %183 = arith.mulf %53, %182 : vector<16x32xf32>
    %184 = arith.truncf %183 : vector<16x32xf32> to vector<16x32xbf16>
    %cst_71 = arith.constant dense<0.000000e+00> : vector<16x32xf32>
    %185 = tpu.matmul %181, %184, %cst_71 {dimension_numbers = #tpu.dot_dimension_numbers<[1], [0], [0], [1], [0, 0, 1, 1], [], []>} : vector<16x16xbf16>, vector<16x32xbf16>, vector<16x32xf32> -> vector<16x32xf32>
    %186 = arith.addf %164, %185 : vector<16x32xf32>
    %c6 = arith.constant 6 : index
    %c0_72 = arith.constant 0 : index
    %187 = vector.load %arg17[%c6, %c0_72] : memref<8x32xf32, #tpu.memory_space<vmem>>, vector<1x32xf32>
    %188 = vector.broadcast %187 : vector<1x32xf32> to vector<16x32xf32>
    %189 = arith.mulf %39, %188 : vector<16x32xf32>
    %190 = arith.truncf %189 : vector<16x32xf32> to vector<16x32xbf16>
    %191 = arith.truncf %46 : vector<16x32xf32> to vector<16x32xbf16>
    %cst_73 = arith.constant dense<0.000000e+00> : vector<16x16xf32>
    %192 = tpu.matmul %190, %191, %cst_73 {dimension_numbers = #tpu.dot_dimension_numbers<[1], [1], [0], [0], [0, 0, 1, 0], [], []>} : vector<16x32xbf16>, vector<16x32xbf16>, vector<16x16xf32> -> vector<16x16xf32>
    %cst_74 = arith.constant dense<0xFF800000> : vector<16xf32>
    %193 = vector.multi_reduction <maximumf>, %192, %cst_74 [1] : vector<16x16xf32> to vector<16xf32>
    %194 = vector.shape_cast %193 : vector<16xf32> to vector<16x1xf32>
    %195 = vector.broadcast %194 : vector<16x1xf32> to vector<16x16xf32>
    %196 = arith.subf %192, %195 : vector<16x16xf32>
    %197 = math.exp %196 : vector<16x16xf32>
    %cst_75 = arith.constant dense<0.000000e+00> : vector<16xf32>
    %198 = vector.multi_reduction <add>, %197, %cst_75 [1] : vector<16x16xf32> to vector<16xf32>
    %199 = vector.shape_cast %198 : vector<16xf32> to vector<16x1xf32>
    %200 = tpu.reciprocal %199 {approx = true} : vector<16x1xf32> -> vector<16x1xf32>
    %201 = vector.broadcast %200 : vector<16x1xf32> to vector<16x16xf32>
    %202 = arith.mulf %197, %201 : vector<16x16xf32>
    %203 = arith.truncf %202 : vector<16x16xf32> to vector<16x16xbf16>
    %204 = vector.broadcast %187 : vector<1x32xf32> to vector<16x32xf32>
    %205 = arith.mulf %53, %204 : vector<16x32xf32>
    %206 = arith.truncf %205 : vector<16x32xf32> to vector<16x32xbf16>
    %cst_76 = arith.constant dense<0.000000e+00> : vector<16x32xf32>
    %207 = tpu.matmul %203, %206, %cst_76 {dimension_numbers = #tpu.dot_dimension_numbers<[1], [0], [0], [1], [0, 0, 1, 1], [], []>} : vector<16x16xbf16>, vector<16x32xbf16>, vector<16x32xf32> -> vector<16x32xf32>
    %208 = arith.addf %186, %207 : vector<16x32xf32>
    %c7 = arith.constant 7 : index
    %c0_77 = arith.constant 0 : index
    %209 = vector.load %arg17[%c7, %c0_77] : memref<8x32xf32, #tpu.memory_space<vmem>>, vector<1x32xf32>
    %210 = vector.broadcast %209 : vector<1x32xf32> to vector<16x32xf32>
    %211 = arith.mulf %39, %210 : vector<16x32xf32>
    %212 = arith.truncf %211 : vector<16x32xf32> to vector<16x32xbf16>
    %213 = arith.truncf %46 : vector<16x32xf32> to vector<16x32xbf16>
    %cst_78 = arith.constant dense<0.000000e+00> : vector<16x16xf32>
    %214 = tpu.matmul %212, %213, %cst_78 {dimension_numbers = #tpu.dot_dimension_numbers<[1], [1], [0], [0], [0, 0, 1, 0], [], []>} : vector<16x32xbf16>, vector<16x32xbf16>, vector<16x16xf32> -> vector<16x16xf32>
    %cst_79 = arith.constant dense<0xFF800000> : vector<16xf32>
    %215 = vector.multi_reduction <maximumf>, %214, %cst_79 [1] : vector<16x16xf32> to vector<16xf32>
    %216 = vector.shape_cast %215 : vector<16xf32> to vector<16x1xf32>
    %217 = vector.broadcast %216 : vector<16x1xf32> to vector<16x16xf32>
    %218 = arith.subf %214, %217 : vector<16x16xf32>
    %219 = math.exp %218 : vector<16x16xf32>
    %cst_80 = arith.constant dense<0.000000e+00> : vector<16xf32>
    %220 = vector.multi_reduction <add>, %219, %cst_80 [1] : vector<16x16xf32> to vector<16xf32>
    %221 = vector.shape_cast %220 : vector<16xf32> to vector<16x1xf32>
    %222 = tpu.reciprocal %221 {approx = true} : vector<16x1xf32> -> vector<16x1xf32>
    %223 = vector.broadcast %222 : vector<16x1xf32> to vector<16x16xf32>
    %224 = arith.mulf %219, %223 : vector<16x16xf32>
    %225 = arith.truncf %224 : vector<16x16xf32> to vector<16x16xbf16>
    %226 = vector.broadcast %209 : vector<1x32xf32> to vector<16x32xf32>
    %227 = arith.mulf %53, %226 : vector<16x32xf32>
    %228 = arith.truncf %227 : vector<16x32xf32> to vector<16x32xbf16>
    %cst_81 = arith.constant dense<0.000000e+00> : vector<16x32xf32>
    %229 = tpu.matmul %225, %228, %cst_81 {dimension_numbers = #tpu.dot_dimension_numbers<[1], [0], [0], [1], [0, 0, 1, 1], [], []>} : vector<16x16xbf16>, vector<16x32xbf16>, vector<16x32xf32> -> vector<16x32xf32>
    %230 = arith.addf %208, %229 : vector<16x32xf32>
    %231 = arith.addf %30, %230 : vector<16x32xf32>
    %c0_82 = arith.constant 0 : index
    %c0_83 = arith.constant 0 : index
    %232 = vector.load %arg18[%c0_82, %c0_83] : memref<1x32xf32, #tpu.memory_space<vmem>>, vector<1x32xf32>
    %c0_84 = arith.constant 0 : index
    %c0_85 = arith.constant 0 : index
    %233 = vector.load %arg19[%c0_84, %c0_85] : memref<1x32xf32, #tpu.memory_space<vmem>>, vector<1x32xf32>
    %cst_86 = arith.constant dense<0.000000e+00> : vector<16xf32>
    %234 = vector.multi_reduction <add>, %231, %cst_86 [1] : vector<16x32xf32> to vector<16xf32>
    %235 = vector.shape_cast %234 : vector<16xf32> to vector<16x1xf32>
    %cst_87 = arith.constant 3.200000e+01 : f32
    %236 = vector.broadcast %cst_87 : f32 to vector<16x1xf32>
    %237 = arith.divf %235, %236 : vector<16x1xf32>
    %238 = vector.broadcast %237 : vector<16x1xf32> to vector<16x32xf32>
    %239 = arith.subf %231, %238 : vector<16x32xf32>
    %240 = arith.mulf %239, %239 : vector<16x32xf32>
    %cst_88 = arith.constant dense<0.000000e+00> : vector<16xf32>
    %241 = vector.multi_reduction <add>, %240, %cst_88 [1] : vector<16x32xf32> to vector<16xf32>
    %242 = vector.shape_cast %241 : vector<16xf32> to vector<16x1xf32>
    %cst_89 = arith.constant 3.200000e+01 : f32
    %243 = vector.broadcast %cst_89 : f32 to vector<16x1xf32>
    %244 = arith.divf %242, %243 : vector<16x1xf32>
    %cst_90 = arith.constant 9.99999974E-6 : f32
    %245 = vector.broadcast %cst_90 : f32 to vector<16x1xf32>
    %246 = arith.addf %244, %245 : vector<16x1xf32>
    %247 = math.rsqrt %246 : vector<16x1xf32>
    %248 = vector.broadcast %247 : vector<16x1xf32> to vector<16x32xf32>
    %249 = arith.mulf %239, %248 : vector<16x32xf32>
    %250 = vector.broadcast %232 : vector<1x32xf32> to vector<16x32xf32>
    %251 = arith.mulf %249, %250 : vector<16x32xf32>
    %252 = vector.broadcast %233 : vector<1x32xf32> to vector<16x32xf32>
    %253 = arith.addf %251, %252 : vector<16x32xf32>
    %c0_91 = arith.constant 0 : index
    %c0_92 = arith.constant 0 : index
    %254 = vector.load %arg20[%c0_91, %c0_92] : memref<32x32xf32, #tpu.memory_space<vmem>>, vector<32x32xf32>
    %255 = arith.truncf %253 : vector<16x32xf32> to vector<16x32xbf16>
    %256 = arith.truncf %254 : vector<32x32xf32> to vector<32x32xbf16>
    %cst_93 = arith.constant dense<0.000000e+00> : vector<16x32xf32>
    %257 = tpu.matmul %255, %256, %cst_93 {dimension_numbers = #tpu.dot_dimension_numbers<[1], [0], [0], [1], [0, 0, 1, 1], [], []>} : vector<16x32xbf16>, vector<32x32xbf16>, vector<16x32xf32> -> vector<16x32xf32>
    %c0_94 = arith.constant 0 : index
    %c0_95 = arith.constant 0 : index
    %258 = vector.load %arg21[%c0_94, %c0_95] : memref<1x32xf32, #tpu.memory_space<vmem>>, vector<1x32xf32>
    %259 = vector.broadcast %258 : vector<1x32xf32> to vector<16x32xf32>
    %260 = arith.addf %257, %259 : vector<16x32xf32>
    %cst_96 = arith.constant 5.000000e-01 : f32
    %261 = vector.broadcast %cst_96 : f32 to vector<16x32xf32>
    %262 = arith.mulf %261, %260 : vector<16x32xf32>
    %cst_97 = arith.constant 0.707106769 : f32
    %263 = vector.broadcast %cst_97 : f32 to vector<16x32xf32>
    %264 = arith.mulf %260, %263 : vector<16x32xf32>
    %265 = math.erf %264 : vector<16x32xf32>
    %cst_98 = arith.constant 1.000000e+00 : f32
    %266 = vector.broadcast %cst_98 : f32 to vector<16x32xf32>
    %267 = arith.addf %266, %265 : vector<16x32xf32>
    %268 = arith.mulf %262, %267 : vector<16x32xf32>
    %c0_99 = arith.constant 0 : index
    %c0_100 = arith.constant 0 : index
    %269 = vector.load %arg22[%c0_99, %c0_100] : memref<32x32xf32, #tpu.memory_space<vmem>>, vector<32x32xf32>
    %270 = arith.truncf %268 : vector<16x32xf32> to vector<16x32xbf16>
    %271 = arith.truncf %269 : vector<32x32xf32> to vector<32x32xbf16>
    %cst_101 = arith.constant dense<0.000000e+00> : vector<16x32xf32>
    %272 = tpu.matmul %270, %271, %cst_101 {dimension_numbers = #tpu.dot_dimension_numbers<[1], [0], [0], [1], [0, 0, 1, 1], [], []>} : vector<16x32xbf16>, vector<32x32xbf16>, vector<16x32xf32> -> vector<16x32xf32>
    %c0_102 = arith.constant 0 : index
    %c0_103 = arith.constant 0 : index
    %273 = vector.load %arg23[%c0_102, %c0_103] : memref<1x32xf32, #tpu.memory_space<vmem>>, vector<1x32xf32>
    %274 = vector.broadcast %273 : vector<1x32xf32> to vector<16x32xf32>
    %275 = arith.addf %272, %274 : vector<16x32xf32>
    %276 = arith.addf %253, %275 : vector<16x32xf32>
    %c0_104 = arith.constant 0 : index
    %c0_105 = arith.constant 0 : index
    %277 = vector.load %arg24[%c0_104, %c0_105] : memref<1x32xf32, #tpu.memory_space<vmem>>, vector<1x32xf32>
    %c0_106 = arith.constant 0 : index
    %c0_107 = arith.constant 0 : index
    %278 = vector.load %arg25[%c0_106, %c0_107] : memref<1x32xf32, #tpu.memory_space<vmem>>, vector<1x32xf32>
    %cst_108 = arith.constant dense<0.000000e+00> : vector<16xf32>
    %279 = vector.multi_reduction <add>, %276, %cst_108 [1] : vector<16x32xf32> to vector<16xf32>
    %280 = vector.shape_cast %279 : vector<16xf32> to vector<16x1xf32>
    %cst_109 = arith.constant 3.200000e+01 : f32
    %281 = vector.broadcast %cst_109 : f32 to vector<16x1xf32>
    %282 = arith.divf %280, %281 : vector<16x1xf32>
    %283 = vector.broadcast %282 : vector<16x1xf32> to vector<16x32xf32>
    %284 = arith.subf %276, %283 : vector<16x32xf32>
    %285 = arith.mulf %284, %284 : vector<16x32xf32>
    %cst_110 = arith.constant dense<0.000000e+00> : vector<16xf32>
    %286 = vector.multi_reduction <add>, %285, %cst_110 [1] : vector<16x32xf32> to vector<16xf32>
    %287 = vector.shape_cast %286 : vector<16xf32> to vector<16x1xf32>
    %cst_111 = arith.constant 3.200000e+01 : f32
    %288 = vector.broadcast %cst_111 : f32 to vector<16x1xf32>
    %289 = arith.divf %287, %288 : vector<16x1xf32>
    %cst_112 = arith.constant 9.99999974E-6 : f32
    %290 = vector.broadcast %cst_112 : f32 to vector<16x1xf32>
    %291 = arith.addf %289, %290 : vector<16x1xf32>
    %292 = math.rsqrt %291 : vector<16x1xf32>
    %293 = vector.broadcast %292 : vector<16x1xf32> to vector<16x32xf32>
    %294 = arith.mulf %284, %293 : vector<16x32xf32>
    %295 = vector.broadcast %277 : vector<1x32xf32> to vector<16x32xf32>
    %296 = arith.mulf %294, %295 : vector<16x32xf32>
    %297 = vector.broadcast %278 : vector<1x32xf32> to vector<16x32xf32>
    %298 = arith.addf %296, %297 : vector<16x32xf32>
    %c0_113 = arith.constant 0 : index
    %c0_114 = arith.constant 0 : index
    %299 = vector.load %arg26[%c0_113, %c0_114] : memref<32x64xf32, #tpu.memory_space<vmem>>, vector<32x64xf32>
    %300 = arith.truncf %298 : vector<16x32xf32> to vector<16x32xbf16>
    %301 = arith.truncf %299 : vector<32x64xf32> to vector<32x64xbf16>
    %cst_115 = arith.constant dense<0.000000e+00> : vector<16x64xf32>
    %302 = tpu.matmul %300, %301, %cst_115 {dimension_numbers = #tpu.dot_dimension_numbers<[1], [0], [0], [1], [0, 0, 1, 1], [], []>} : vector<16x32xbf16>, vector<32x64xbf16>, vector<16x64xf32> -> vector<16x64xf32>
    %c0_116 = arith.constant 0 : index
    %c0_117 = arith.constant 0 : index
    %c0_118 = arith.constant 0 : index
    %303 = vector.load %arg33[%c0_116, %c0_117, %c0_118] : memref<1x16x64xf32, #tpu.memory_space<vmem>>, vector<1x16x64xf32>
    %304 = vector.shape_cast %303 : vector<1x16x64xf32> to vector<16x64xf32>
    %305 = vector.shape_cast %302 : vector<16x64xf32> to vector<1x16x64xf32>
    tpu.vector_store %arg33[%c0_116, %c0_117, %c0_118], %305 {strides = array<i32>} : memref<1x16x64xf32, #tpu.memory_space<vmem>>, vector<1x16x64xf32>,
    %c0_119 = arith.constant 0 : index
    %c0_120 = arith.constant 0 : index
    %306 = vector.load %arg27[%c0_119, %c0_120] : memref<64x2xf32, #tpu.memory_space<vmem>>, vector<64x2xf32>
    %307 = arith.truncf %302 : vector<16x64xf32> to vector<16x64xbf16>
    %308 = arith.truncf %306 : vector<64x2xf32> to vector<64x2xbf16>
    %cst_121 = arith.constant dense<0.000000e+00> : vector<16x2xf32>
    %309 = tpu.matmul %307, %308, %cst_121 {dimension_numbers = #tpu.dot_dimension_numbers<[1], [0], [0], [1], [0, 0, 1, 1], [], []>} : vector<16x64xbf16>, vector<64x2xbf16>, vector<16x2xf32> -> vector<16x2xf32>
    %c0_122 = arith.constant 0 : index
    %c0_123 = arith.constant 0 : index
    %310 = vector.load %arg28[%c0_122, %c0_123] : memref<1x2xf32, #tpu.memory_space<vmem>>, vector<1x2xf32>
    %311 = vector.broadcast %310 : vector<1x2xf32> to vector<16x2xf32>
    %312 = arith.addf %309, %311 : vector<16x2xf32>
    %c0_124 = arith.constant 0 : index
    %c0_125 = arith.constant 0 : index
    %c0_126 = arith.constant 0 : index
    %313 = vector.load %arg34[%c0_124, %c0_125, %c0_126] : memref<1x16x2xf32, #tpu.memory_space<vmem>>, vector<1x16x2xf32>
    %314 = vector.shape_cast %313 : vector<1x16x2xf32> to vector<16x2xf32>
    %315 = vector.shape_cast %312 : vector<16x2xf32> to vector<1x16x2xf32>
    tpu.vector_store %arg34[%c0_124, %c0_125, %c0_126], %315 {strides = array<i32>} : memref<1x16x2xf32, #tpu.memory_space<vmem>>, vector<1x16x2xf32>,
    %c0_127 = arith.constant 0 : index
    %c0_128 = arith.constant 0 : index
    %316 = vector.load %arg29[%c0_127, %c0_128] : memref<64x1xf32, #tpu.memory_space<vmem>>, vector<64x1xf32>
    %317 = arith.truncf %302 : vector<16x64xf32> to vector<16x64xbf16>
    %318 = arith.truncf %316 : vector<64x1xf32> to vector<64x1xbf16>
    %cst_129 = arith.constant dense<0.000000e+00> : vector<16x1xf32>
    %319 = tpu.matmul %317, %318, %cst_129 {dimension_numbers = #tpu.dot_dimension_numbers<[1], [0], [0], [1], [0, 0, 1, 1], [], []>} : vector<16x64xbf16>, vector<64x1xbf16>, vector<16x1xf32> -> vector<16x1xf32>
    %c0_130 = arith.constant 0 : index
    %c0_131 = arith.constant 0 : index
    %320 = vector.load %arg30[%c0_130, %c0_131] : memref<1x1xf32, #tpu.memory_space<vmem>>, vector<1x1xf32>
    %321 = vector.broadcast %320 : vector<1x1xf32> to vector<16x1xf32>
    %322 = arith.addf %319, %321 : vector<16x1xf32>
    %c0_132 = arith.constant 0 : index
    %c0_133 = arith.constant 0 : index
    %c0_134 = arith.constant 0 : index
    %323 = vector.load %arg35[%c0_132, %c0_133, %c0_134] : memref<1x16x1xf32, #tpu.memory_space<vmem>>, vector<1x16x1xf32>
    %324 = vector.shape_cast %323 : vector<1x16x1xf32> to vector<16x1xf32>
    %325 = vector.shape_cast %322 : vector<16x1xf32> to vector<1x16x1xf32>
    tpu.vector_store %arg35[%c0_132, %c0_133, %c0_134], %325 {strides = array<i32>} : memref<1x16x1xf32, #tpu.memory_space<vmem>>, vector<1x16x1xf32>,
    %c0_135 = arith.constant 0 : index
    %c0_136 = arith.constant 0 : index
    %326 = vector.load %arg31[%c0_135, %c0_136] : memref<64x16xf32, #tpu.memory_space<vmem>>, vector<64x16xf32>
    %327 = arith.truncf %302 : vector<16x64xf32> to vector<16x64xbf16>
    %328 = arith.truncf %326 : vector<64x16xf32> to vector<64x16xbf16>
    %cst_137 = arith.constant dense<0.000000e+00> : vector<16x16xf32>
    %329 = tpu.matmul %327, %328, %cst_137 {dimension_numbers = #tpu.dot_dimension_numbers<[1], [0], [0], [1], [0, 0, 1, 1], [], []>} : vector<16x64xbf16>, vector<64x16xbf16>, vector<16x16xf32> -> vector<16x16xf32>
    %cst_138 = arith.constant dense<0xFF800000> : vector<16xf32>
    %330 = vector.multi_reduction <maximumf>, %329, %cst_138 [1] : vector<16x16xf32> to vector<16xf32>
    %331 = vector.shape_cast %330 : vector<16xf32> to vector<16x1xf32>
    %332 = vector.broadcast %331 : vector<16x1xf32> to vector<16x16xf32>
    %333 = arith.subf %329, %332 : vector<16x16xf32>
    %334 = math.exp %333 : vector<16x16xf32>
    %cst_139 = arith.constant dense<0.000000e+00> : vector<16xf32>
    %335 = vector.multi_reduction <add>, %334, %cst_139 [1] : vector<16x16xf32> to vector<16xf32>
    %336 = vector.shape_cast %335 : vector<16xf32> to vector<16x1xf32>
    %337 = tpu.reciprocal %336 {approx = true} : vector<16x1xf32> -> vector<16x1xf32>
    %338 = vector.broadcast %337 : vector<16x1xf32> to vector<16x16xf32>
    %339 = arith.mulf %334, %338 : vector<16x16xf32>
    %c0_140 = arith.constant 0 : index
    %c0_141 = arith.constant 0 : index
    %c0_142 = arith.constant 0 : index
    %340 = vector.load %arg36[%c0_140, %c0_141, %c0_142] : memref<1x16x16xf32, #tpu.memory_space<vmem>>, vector<1x16x16xf32>
    %341 = vector.shape_cast %340 : vector<1x16x16xf32> to vector<16x16xf32>
    %342 = vector.shape_cast %339 : vector<16x16xf32> to vector<1x16x16xf32>
    tpu.vector_store %arg36[%c0_140, %c0_141, %c0_142], %342 {strides = array<i32>} : memref<1x16x16xf32, #tpu.memory_space<vmem>>, vector<1x16x16xf32>,
    %c0_143 = arith.constant 0 : index
    %c0_144 = arith.constant 0 : index
    %343 = vector.load %arg32[%c0_143, %c0_144] : memref<64x8xf32, #tpu.memory_space<vmem>>, vector<64x8xf32>
    %344 = arith.truncf %302 : vector<16x64xf32> to vector<16x64xbf16>
    %345 = arith.truncf %343 : vector<64x8xf32> to vector<64x8xbf16>
    %cst_145 = arith.constant dense<0.000000e+00> : vector<16x8xf32>
    %346 = tpu.matmul %344, %345, %cst_145 {dimension_numbers = #tpu.dot_dimension_numbers<[1], [0], [0], [1], [0, 0, 1, 1], [], []>} : vector<16x64xbf16>, vector<64x8xbf16>, vector<16x8xf32> -> vector<16x8xf32>
    %cst_146 = arith.constant dense<0xFF800000> : vector<16xf32>
    %347 = vector.multi_reduction <maximumf>, %346, %cst_146 [1] : vector<16x8xf32> to vector<16xf32>
    %348 = vector.shape_cast %347 : vector<16xf32> to vector<16x1xf32>
    %349 = vector.broadcast %348 : vector<16x1xf32> to vector<16x8xf32>
    %350 = arith.subf %346, %349 : vector<16x8xf32>
    %351 = math.exp %350 : vector<16x8xf32>
    %cst_147 = arith.constant dense<0.000000e+00> : vector<16xf32>
    %352 = vector.multi_reduction <add>, %351, %cst_147 [1] : vector<16x8xf32> to vector<16xf32>
    %353 = vector.shape_cast %352 : vector<16xf32> to vector<16x1xf32>
    %354 = tpu.reciprocal %353 {approx = true} : vector<16x1xf32> -> vector<16x1xf32>
    %355 = vector.broadcast %354 : vector<16x1xf32> to vector<16x8xf32>
    %356 = arith.mulf %351, %355 : vector<16x8xf32>
    %c0_148 = arith.constant 0 : index
    %c0_149 = arith.constant 0 : index
    %c0_150 = arith.constant 0 : index
    %357 = vector.load %arg37[%c0_148, %c0_149, %c0_150] : memref<1x16x8xf32, #tpu.memory_space<vmem>>, vector<1x16x8xf32>
    %358 = vector.shape_cast %357 : vector<1x16x8xf32> to vector<16x8xf32>
    %359 = vector.shape_cast %356 : vector<16x8xf32> to vector<1x16x8xf32>
    tpu.vector_store %arg37[%c0_148, %c0_149, %c0_150], %359 {strides = array<i32>} : memref<1x16x8xf32, #tpu.memory_space<vmem>>, vector<1x16x8xf32>,
    return
  }
  func.func @transform_0(%arg0: i32) -> (i32, i32, i32) {
    %c0_i32 = arith.constant 0 : i32
    %c0_i32_0 = arith.constant 0 : i32
    %c0_i32_1 = arith.constant 0 : i32
    return %arg0, %c0_i32, %c0_i32_0 : i32, i32, i32
  }
  func.func @transform_1(%arg0: i32) -> (i32, i32, i32) {
    %c0_i32 = arith.constant 0 : i32
    %c0_i32_0 = arith.constant 0 : i32
    %c0_i32_1 = arith.constant 0 : i32
    return %arg0, %c0_i32, %c0_i32_0 : i32, i32, i32
  }
  func.func @transform_2(%arg0: i32) -> (i32, i32, i32) {
    %c0_i32 = arith.constant 0 : i32
    %c0_i32_0 = arith.constant 0 : i32
    %c0_i32_1 = arith.constant 0 : i32
    return %arg0, %c0_i32, %c0_i32_0 : i32, i32, i32
  }
  func.func @transform_3(%arg0: i32) -> (i32, i32) {
    %c0_i32 = arith.constant 0 : i32
    %c0_i32_0 = arith.constant 0 : i32
    %c0_i32_1 = arith.constant 0 : i32
    return %c0_i32, %c0_i32_0 : i32, i32
  }
  func.func @transform_4(%arg0: i32) -> (i32, i32) {
    %c0_i32 = arith.constant 0 : i32
    %c0_i32_0 = arith.constant 0 : i32
    %c0_i32_1 = arith.constant 0 : i32
    return %c0_i32, %c0_i32_0 : i32, i32
  }
  func.func @transform_5(%arg0: i32) -> (i32, i32) {
    %c0_i32 = arith.constant 0 : i32
    %c0_i32_0 = arith.constant 0 : i32
    %c0_i32_1 = arith.constant 0 : i32
    return %c0_i32, %c0_i32_0 : i32, i32
  }
  func.func @transform_6(%arg0: i32) -> (i32, i32) {
    %c0_i32 = arith.constant 0 : i32
    %c0_i32_0 = arith.constant 0 : i32
    %c0_i32_1 = arith.constant 0 : i32
    return %c0_i32, %c0_i32_0 : i32, i32
  }
  func.func @transform_7(%arg0: i32) -> (i32, i32) {
    %c0_i32 = arith.constant 0 : i32
    %c0_i32_0 = arith.constant 0 : i32
    %c0_i32_1 = arith.constant 0 : i32
    return %c0_i32, %c0_i32_0 : i32, i32
  }
  func.func @transform_8(%arg0: i32) -> (i32, i32) {
    %c0_i32 = arith.constant 0 : i32
    %c0_i32_0 = arith.constant 0 : i32
    %c0_i32_1 = arith.constant 0 : i32
    return %c0_i32, %c0_i32_0 : i32, i32
  }
  func.func @transform_9(%arg0: i32) -> (i32, i32) {
    %c0_i32 = arith.constant 0 : i32
    %c0_i32_0 = arith.constant 0 : i32
    %c0_i32_1 = arith.constant 0 : i32
    return %c0_i32, %c0_i32_0 : i32, i32
  }
  func.func @transform_10(%arg0: i32) -> (i32, i32) {
    %c0_i32 = arith.constant 0 : i32
    %c0_i32_0 = arith.constant 0 : i32
    %c0_i32_1 = arith.constant 0 : i32
    return %c0_i32, %c0_i32_0 : i32, i32
  }
  func.func @transform_11(%arg0: i32) -> (i32, i32) {
    %c0_i32 = arith.constant 0 : i32
    %c0_i32_0 = arith.constant 0 : i32
    %c0_i32_1 = arith.constant 0 : i32
    return %c0_i32, %c0_i32_0 : i32, i32
  }
  func.func @transform_12(%arg0: i32) -> (i32, i32) {
    %c0_i32 = arith.constant 0 : i32
    %c0_i32_0 = arith.constant 0 : i32
    %c0_i32_1 = arith.constant 0 : i32
    return %c0_i32, %c0_i32_0 : i32, i32
  }
  func.func @transform_13(%arg0: i32) -> (i32, i32) {
    %c0_i32 = arith.constant 0 : i32
    %c0_i32_0 = arith.constant 0 : i32
    %c0_i32_1 = arith.constant 0 : i32
    return %c0_i32, %c0_i32_0 : i32, i32
  }
  func.func @transform_14(%arg0: i32) -> (i32, i32) {
    %c0_i32 = arith.constant 0 : i32
    %c0_i32_0 = arith.constant 0 : i32
    %c0_i32_1 = arith.constant 0 : i32
    return %c0_i32, %c0_i32_0 : i32, i32
  }
  func.func @transform_15(%arg0: i32) -> (i32, i32) {
    %c0_i32 = arith.constant 0 : i32
    %c0_i32_0 = arith.constant 0 : i32
    %c0_i32_1 = arith.constant 0 : i32
    return %c0_i32, %c0_i32_0 : i32, i32
  }
  func.func @transform_16(%arg0: i32) -> (i32, i32) {
    %c0_i32 = arith.constant 0 : i32
    %c0_i32_0 = arith.constant 0 : i32
    %c0_i32_1 = arith.constant 0 : i32
    return %c0_i32, %c0_i32_0 : i32, i32
  }
  func.func @transform_17(%arg0: i32) -> (i32, i32) {
    %c0_i32 = arith.constant 0 : i32
    %c0_i32_0 = arith.constant 0 : i32
    %c0_i32_1 = arith.constant 0 : i32
    return %c0_i32, %c0_i32_0 : i32, i32
  }
  func.func @transform_18(%arg0: i32) -> (i32, i32) {
    %c0_i32 = arith.constant 0 : i32
    %c0_i32_0 = arith.constant 0 : i32
    %c0_i32_1 = arith.constant 0 : i32
    return %c0_i32, %c0_i32_0 : i32, i32
  }
  func.func @transform_19(%arg0: i32) -> (i32, i32) {
    %c0_i32 = arith.constant 0 : i32
    %c0_i32_0 = arith.constant 0 : i32
    %c0_i32_1 = arith.constant 0 : i32
    return %c0_i32, %c0_i32_0 : i32, i32
  }
  func.func @transform_20(%arg0: i32) -> (i32, i32) {
    %c0_i32 = arith.constant 0 : i32
    %c0_i32_0 = arith.constant 0 : i32
    %c0_i32_1 = arith.constant 0 : i32
    return %c0_i32, %c0_i32_0 : i32, i32
  }
  func.func @transform_21(%arg0: i32) -> (i32, i32) {
    %c0_i32 = arith.constant 0 : i32
    %c0_i32_0 = arith.constant 0 : i32
    %c0_i32_1 = arith.constant 0 : i32
    return %c0_i32, %c0_i32_0 : i32, i32
  }
  func.func @transform_22(%arg0: i32) -> (i32, i32) {
    %c0_i32 = arith.constant 0 : i32
    %c0_i32_0 = arith.constant 0 : i32
    %c0_i32_1 = arith.constant 0 : i32
    return %c0_i32, %c0_i32_0 : i32, i32
  }
  func.func @transform_23(%arg0: i32) -> (i32, i32) {
    %c0_i32 = arith.constant 0 : i32
    %c0_i32_0 = arith.constant 0 : i32
    %c0_i32_1 = arith.constant 0 : i32
    return %c0_i32, %c0_i32_0 : i32, i32
  }
  func.func @transform_24(%arg0: i32) -> (i32, i32) {
    %c0_i32 = arith.constant 0 : i32
    %c0_i32_0 = arith.constant 0 : i32
    %c0_i32_1 = arith.constant 0 : i32
    return %c0_i32, %c0_i32_0 : i32, i32
  }
  func.func @transform_25(%arg0: i32) -> (i32, i32) {
    %c0_i32 = arith.constant 0 : i32
    %c0_i32_0 = arith.constant 0 : i32
    %c0_i32_1 = arith.constant 0 : i32
    return %c0_i32, %c0_i32_0 : i32, i32
  }
  func.func @transform_26(%arg0: i32) -> (i32, i32) {
    %c0_i32 = arith.constant 0 : i32
    %c0_i32_0 = arith.constant 0 : i32
    %c0_i32_1 = arith.constant 0 : i32
    return %c0_i32, %c0_i32_0 : i32, i32
  }
  func.func @transform_27(%arg0: i32) -> (i32, i32) {
    %c0_i32 = arith.constant 0 : i32
    %c0_i32_0 = arith.constant 0 : i32
    %c0_i32_1 = arith.constant 0 : i32
    return %c0_i32, %c0_i32_0 : i32, i32
  }
  func.func @transform_28(%arg0: i32) -> (i32, i32) {
    %c0_i32 = arith.constant 0 : i32
    %c0_i32_0 = arith.constant 0 : i32
    %c0_i32_1 = arith.constant 0 : i32
    return %c0_i32, %c0_i32_0 : i32, i32
  }
  func.func @transform_29(%arg0: i32) -> (i32, i32) {
    %c0_i32 = arith.constant 0 : i32
    %c0_i32_0 = arith.constant 0 : i32
    %c0_i32_1 = arith.constant 0 : i32
    return %c0_i32, %c0_i32_0 : i32, i32
  }
  func.func @transform_30(%arg0: i32) -> (i32, i32) {
    %c0_i32 = arith.constant 0 : i32
    %c0_i32_0 = arith.constant 0 : i32
    %c0_i32_1 = arith.constant 0 : i32
    return %c0_i32, %c0_i32_0 : i32, i32
  }
  func.func @transform_31(%arg0: i32) -> (i32, i32) {
    %c0_i32 = arith.constant 0 : i32
    %c0_i32_0 = arith.constant 0 : i32
    %c0_i32_1 = arith.constant 0 : i32
    return %c0_i32, %c0_i32_0 : i32, i32
  }
  func.func @transform_32(%arg0: i32) -> (i32, i32, i32) {
    %c0_i32 = arith.constant 0 : i32
    %c0_i32_0 = arith.constant 0 : i32
    %c0_i32_1 = arith.constant 0 : i32
    return %arg0, %c0_i32, %c0_i32_0 : i32, i32, i32
  }
  func.func @transform_33(%arg0: i32) -> (i32, i32, i32) {
    %c0_i32 = arith.constant 0 : i32
    %c0_i32_0 = arith.constant 0 : i32
    %c0_i32_1 = arith.constant 0 : i32
    return %arg0, %c0_i32, %c0_i32_0 : i32, i32, i32
  }
  func.func @transform_34(%arg0: i32) -> (i32, i32, i32) {
    %c0_i32 = arith.constant 0 : i32
    %c0_i32_0 = arith.constant 0 : i32
    %c0_i32_1 = arith.constant 0 : i32
    return %arg0, %c0_i32, %c0_i32_0 : i32, i32, i32
  }
  func.func @transform_35(%arg0: i32) -> (i32, i32, i32) {
    %c0_i32 = arith.constant 0 : i32
    %c0_i32_0 = arith.constant 0 : i32
    %c0_i32_1 = arith.constant 0 : i32
    return %arg0, %c0_i32, %c0_i32_0 : i32, i32, i32
  }
  func.func @transform_36(%arg0: i32) -> (i32, i32, i32) {
    %c0_i32 = arith.constant 0 : i32
    %c0_i32_0 = arith.constant 0 : i32
    %c0_i32_1 = arith.constant 0 : i32
    return %arg0, %c0_i32, %c0_i32_0 : i32, i32, i32
  }
}

</mosaic_0001>

<bundles_post_ra>
// kernel: loop_attention_forward.1
= control target key start
LH: loop header
LB: loop body
LE: loop exit
PB: predicated region body
PF: predicated region fallthrough
CT: control target
= control target key end

     0   :  { %s4024_s6 = smov 1   ;;  %s4025_s10 = smov 2   ;;  %s4942_s0 = inlined_call_operand.smem [shape: u32[37], index: -1, kind: input, shape index: {}] }
   0x1   :  { %s4074_s5 = sld [smem:[%s4942_s0]]   ;;  %s4026_s14 = smov 3  }
   0x2   :  { %s4079_s9 = sld [smem:[%s4942_s0 + %s4024_s6]]   ;;  %s4027_s18 = smov 4  }
   0x3   :  { %s4084_s13 = sld [smem:[%s4942_s0 + %s4025_s10]]   ;;  %s4028_s22 = smov 5  }
   0x4   :  { %s4089_s17 = sld [smem:[%s4942_s0 + %s4026_s14]]   ;;  %s4029_s26 = smov 6  }
   0x5   :  { %s4094_s21 = sld [smem:[%s4942_s0 + %s4027_s18]]   ;;  %s4030_s30 = smov 7  }
   0x6   :  { %s4099_s25 = sld [smem:[%s4942_s0 + %s4028_s22]]   ;;  %s4031_s4 = smov 8  }
   0x7   :  { %4963 = sst [smem:[#allocation9_spill]] %s4074_s5  ;;  %s4032_s10 = smov 9  }
   0x8   :  { %4964 = sst [smem:[#allocation10_spill]] %s4079_s9  ;;  %s4033_s15 = smov 10  }
   0x9   :  { %4965 = sst [smem:[#allocation11_spill]] %s4084_s13  ;;  %s4034_s20 = smov 11  }
   0xa   :  { %s4104_s29 = sld [smem:[%s4942_s0 + %s4029_s26]]   ;;  %s4035_s26 = smov 12  }
   0xb   :  { %s4109_s3 = sld [smem:[%s4942_s0 + %s4030_s30]]   ;;  %s4036_s1 = smov 13  }
   0xc   :  { %s4114_s8 = sld [smem:[%s4942_s0 + %s4031_s4]]   ;;  %s4037_s7 = smov 14  }
   0xd   :  { %s4119_s14 = sld [smem:[%s4942_s0 + %s4032_s10]]   ;;  %s4039_s22 = smov 16  }
   0xe   :  { %s4124_s19 = sld [smem:[%s4942_s0 + %s4033_s15]]   ;;  %s4038_s15 = smov 15  }
   0xf   :  { %s4129_s24 = sld [smem:[%s4942_s0 + %s4034_s20]]   ;;  %s4040_s28 = smov 17  }
  0x10   :  { %s4134_s30 = sld [smem:[%s4942_s0 + %s4035_s26]]   ;;  %s4053_s10 = smov 30  }
  0x11   :  { %4966 = sst [smem:[#allocation12_spill]] %s4109_s3  ;;  %s4054_s16 = smov 31  }
  0x12   :  { %4967 = sst [smem:[#allocation13_spill]] %s4114_s8  ;;  %s4055_s23 = smov 32  }
  0x13   :  { %4968 = sst [smem:[#allocation14_spill]] %s4119_s14 }
  0x14   :  { %s4139_s6 = sld [smem:[%s4942_s0 + %s4036_s1]]   ;;  %s4056_s1 = smov 33  }
  0x15   :  { %4969 = sst [smem:[#allocation15_spill]] %s4129_s24 }
  0x16   :  { %s4144_s12 = sld [smem:[%s4942_s0 + %s4037_s7]]   ;;  %s4041_s7 = smov 18  }
  0x17   :  { %s4149_s20 = sld [smem:[%s4942_s0 + %s4038_s15]]   ;;  %s4042_s15 = smov 19  }
  0x18   :  { %s4154_s27 = sld [smem:[%s4942_s0 + %s4039_s22]]   ;;  %s4043_s22 = smov 20  }
  0x19   :  { %s4159_s4 = sld [smem:[%s4942_s0 + %s4040_s28]]   ;;  %s4044_s28 = smov 21  }
  0x1a   :  { %4970 = sst [smem:[#allocation16_spill]] %s4139_s6 }
  0x1b   :  { %s4164_s6 = sld [smem:[%s4942_s0 + %s4041_s7]]   ;;  %s4045_s7 = smov 22  }
  0x1c   :  { %4971 = sst [smem:[#allocation17_spill]] %s4144_s12 }
  0x1d   :  { %4972 = sst [smem:[#allocation18_spill]] %s4149_s20 }
  0x1e   :  { %4973 = sst [smem:[#allocation19_spill]] %s4154_s27 }
  0x1f   :  { %4974 = sst [smem:[#allocation20_spill]] %s4159_s4 }
  0x20   :  { %s4169_s20 = sld [smem:[%s4942_s0 + %s4042_s15]]   ;;  %s4046_s15 = smov 23  }
  0x21   :  { %4975 = sst [smem:[#allocation21_spill]] %s4164_s6 }
  0x22   :  { %s4174_s27 = sld [smem:[%s4942_s0 + %s4043_s22]]   ;;  %s4047_s22 = smov 24  }
  0x23   :  { %s4179_s4 = sld [smem:[%s4942_s0 + %s4044_s28]]   ;;  %s4048_s28 = smov 25  }
  0x24   :  { %s4184_s6 = sld [smem:[%s4942_s0 + %s4045_s7]]   ;;  %s4049_s7 = smov 26  }
  0x25   :  { %s4237_s24 = sld [smem:[%s4942_s0 + %s4056_s1]]  }
  0x26   :  { %4976 = sst [smem:[#allocation22_spill]] %s4169_s20 }
  0x27   :  { %s4189_s20 = sld [smem:[%s4942_s0 + %s4046_s15]]   ;;  %s4050_s15 = smov 27  }
  0x28   :  { %4977 = sst [smem:[#allocation23_spill]] %s4174_s27 }
  0x29   :  { %4978 = sst [smem:[#allocation24_spill]] %s4179_s4 }
  0x2a   :  { %4979 = sst [smem:[#allocation25_spill]] %s4184_s6 }
  0x2b   :  { %s4194_s27 = sld [smem:[%s4942_s0 + %s4047_s22]]   ;;  %s4051_s22 = smov 28  }
  0x2c   :  { %s4199_s4 = sld [smem:[%s4942_s0 + %s4048_s28]]   ;;  %s4052_s28 = smov 29  }
  0x2d   :  { %4980 = sst [smem:[#allocation26_spill]] %s4189_s20 }
  0x2e   :  { %s4204_s6 = sld [smem:[%s4942_s0 + %s4049_s7]]  }
  0x2f   :  { %s4209_s20 = sld [smem:[%s4942_s0 + %s4050_s15]]  }
  0x31   :  { %4981 = sst [smem:[#allocation27_spill]] %s4194_s27 }
  0x32   :  { %4982 = sst [smem:[#allocation28_spill]] %s4199_s4 }
  0x33   :  { %s4214_s27 = sld [smem:[%s4942_s0 + %s4051_s22]]  }
  0x34   :  { %4983 = sst [smem:[#allocation29_spill]] %s4204_s6 }
  0x35   :  { %4984 = sst [smem:[#allocation30_spill]] %s4209_s20 }
  0x36   :  { %s3376_s4 = sld [smem:[%s4942_s0 + %s4052_s28]]  }
  0x37   :  { %s4222_s6 = sld [smem:[%s4942_s0 + %s4053_s10]]   ;;  %s4057_s10 = smov 34  }
  0x38   :  { %s4227_s20 = sld [smem:[%s4942_s0 + %s4054_s16]]   ;;  %s4058_s16 = smov 35  }
  0x39   :  { %4985 = sst [smem:[#allocation31_spill]] %s4214_s27 }
  0x3a   :  { %s4232_s27 = sld [smem:[%s4942_s0 + %s4055_s23]]   ;;  %s4059_s23 = smov 36  }
  0x3b   :  { %s4252_s28 = sld [smem:[%s4942_s0 + %s4059_s23]]  }
  0x3c   :  { %v79_v0 = vstv %s3376_s4 }
  0x3d   :  { %4986 = sst [smem:[#allocation32_spill]] %s4222_s6  ;;  %80 = vst [vmem:[#allocation2] sm:$0x1] %v79_v0 }
  0x3e   :  { %4987 = sst [smem:[#allocation33_spill]] %s4227_s20 }
  0x3f   :  { %s4242_s6 = sld [smem:[%s4942_s0 + %s4057_s10]]  }
  0x40   :  { %s4247_s20 = sld [smem:[%s4942_s0 + %s4058_s16]]  }
  0x45   :  { %4988 = sst [smem:[#allocation34_spill]] %s4242_s6 }
  0x46   :  { %81 = vsyncpa [#allocation4], 0 }
  0x47   :  { %83 = vsyncpa [#allocation4 + $0x1], 0 }
  0x48   :  { %84 = vsyncpa [#allocation6], 0 }
  0x49   :  { %86 = vsyncpa [#allocation6 + $0x1], 0  ;;  %s4254_s1 = smov 0   ;;  %s4256_s2 = smov 0  }
  0x4a   :  { %s4258_s10 = smov 0   ;;  %s4260_s7 = smov 0  }
  0x4b LB: > { %s4989_s12 = sld [smem:[#allocation17_spill]]  ;;  %s4275_s0 = sadd.s32 4294967295, %s4022_s7   ;;  %s4010_s1 = sphi %s4254_s1, %s5021_s1   ;;  %s4022_s7 = sphi %s4260_s7, %s5024_s7   ;;  %s4018_s10 = sphi %s4258_s10, %s5023_s10   ;;  %s4014_s2 = sphi %s4256_s2, %s5022_s2  }
  0x4c   : > { %s3385_s4 = sadd.s32 4294967294, %s4022_s7   ;;  %s4279_s11 = sadd.s32 1, %s4022_s7  }
  0x4d   : > { %s786_s16 = sadd.s32 1, %s4018_s10  ;;  %s783_s15 = ssub.s32 %s4022_s7, %s4279_s11 }
  0x4e   : > { %p796_p0 = scmp.ne.s32.totalorder %s4018_s10, %s4014_s2  ;;  %p784_p1 = scmp.eq.s32.totalorder %s783_s15, 0 }
  0x4f   : > { %p797_p2 = scmp.eq.s32.totalorder %s4275_s0, 1  ;;  %p802_p3 = scmp.ne.s32.totalorder %s4014_s2, %s4010_s1 }
  0x50   : > { %p803_p4 = scmp.eq.s32.totalorder %s3385_s4, 1  ;;  %p3388_p7 = scmp.ge.s32.totalorder %s4022_s7, 1 }
  0x51   : > { %s4290_s18 = scalar_select %p784_p1, %s4018_s10, %s786_s16  }
  0x52   : > { %p4292_p5 = por %p797_p2, %p796_p0  ;;  %p4296_p6 = por %p803_p4, %p802_p3 }
  0x53   : > { %p1036_p8 = scmp.lt.s32.totalorder %s4022_s7, 3 }
  0x55   : > { %p1037_p9 = pnand %p3388_p7, %p1036_p8 }
  0x56   : > { %s4992_s8 = sld [smem:[#allocation13_spill]] (!%p1037_p9)  ;;  %p1156_p10 = scmp.lt.s32.totalorder (!%p1037_p9), %s4275_s0, 1 }
  0x57   : > { %1040 = sbr.rel (%p1037_p9) target bundleno = 3575 (0xdf7), region = 148  ;;  %s4993_s5 = sld [smem:[#allocation9_spill]] (!%p1037_p9) }
  0x58   : > { %s4994_s9 = sld [smem:[#allocation10_spill]] (!%p1037_p9) }
  0x59   : > { %s4995_s13 = sld [smem:[#allocation11_spill]] (!%p1037_p9) }
  0x5a   : > { %s4996_s3 = sld [smem:[#allocation12_spill]] (!%p1037_p9) }
  0x5b   : > { %s4997_s14 = sld [smem:[#allocation14_spill]] (!%p1037_p9) }
  0x5c   : > { %v1189_v1 = vld [vmem:[%s4089_s17] sm:$0xf]  ;;  %vm1203_vm0 = vcmask 1041408   ;;  %v1251_v3 = vld [vmem:[%s4104_s29 + $0x8] sm:$0xff]  ;;  %v4060_v4 = vmov 0.0   ;;  %vm4061_vm1 = vmmov 0  }
  0x5d   : > { %v1250_v2 = vld [vmem:[%s4104_s29] sm:$0xff]  ;;  %3546 = vmatprep.subr.bf16.mxu0 %v4060_v4  ;;  %3552 = vmatprep.subr.bf16.mxu1 %v4060_v4  ;;  %v1191_v5 = vpack.c.bf16 %v1189_v1, %v1189_v1  ;;  %s1157_s26 = scalar_select %p1156_p10, %s4275_s0, 1  ;;  %vm1319_vm2 = vcmask 1043456   ;;  %vm1199_vm3 = vcmask 31744   ;;  %vm1254_vm4 = vcmask 130048   ;;  %v1381_v20 = vld [vmem:[%s4124_s19 + $0x10] sm:$0xff] }
  0x5e   : > { %v1253_v6 = vpack.c.bf16 %v1251_v3, %v1250_v2  ;;  %v1312_v7 = vld [vmem:[%s4992_s8] sm:$0xff]  ;;  %3548 = vmatprep.mubr.msk.bf16.mxu0 %vm4061_vm1, %v4060_v4  ;;  %3554 = vmatprep.mubr.msk.bf16.mxu1 %vm4061_vm1, %v4060_v4  ;;  %vm1315_vm5 = vcmask 64512   ;;  %v1382_v21 = vld [vmem:[%s4124_s19 + $0x18] sm:$0xff]  ;;  %v1442_v22 = vld [vmem:[%s4134_s30 + $0x10] sm:$0xff]  ;;  %vm1393_vm6 = vcmask 261120   ;;  %s4795_s8 = sand.u32 1, %s4014_s2  }
  0x5f   : > { %v1205_v8 = vsel %vm1203_vm0, %v1191_v5, 0  ;;  %v1314_v9 = vpack.c.bf16 %v1312_v7, %v1312_v7  ;;  %s4315_s4 = sshll.u32 %s1157_s26, 4  ;;  %v1385_v23 = vpack.c.bf16 %v1382_v21, %v1381_v20  ;;  %v1443_v24 = vld [vmem:[%s4134_s30 + $0x18] sm:$0xff]  ;;  %v1379_v26 = vld [vmem:[%s4124_s19] sm:$0xff]  ;;  %v1380_v27 = vld [vmem:[%s4124_s19 + $0x8] sm:$0xff]  ;;  %vm2810_vm7 = vcmask 523264  }
  0x60   : > { %3553 = vmatpush3.bf16.msra.mxu1 %v1253_v6  ;;  %3547 = vmatpush3.bf16.msra.mxu0 %v1205_v8  ;;  %s1160_s16 = scalar_lea.vmem %s4993_s5, %s4315_s4  ;;  %s1165_s15 = scalar_lea.vmem %s4994_s9, %s4315_s4  ;;  %v1445_v25 = vpack.c.bf16 %v1443_v24, %v1442_v22  ;;  %v1440_v28 = vld [vmem:[%s4134_s30] sm:$0xff]  ;;  %v1384_v29 = vpack.c.bf16 %v1380_v27, %v1379_v26  ;;  %v1441_v30 = vld [vmem:[%s4134_s30 + $0x8] sm:$0xff]  ;;  %v1496_v59 = vld [vmem:[%s4989_s12 + $0x10] sm:$0xff]  ;;  %vm2877_vm8 = vcmask 15360   ;;  %vm2940_vm9 = vcmask 7168  }
  0x61   : > { %3564 = vmatprep.subr.bf16.mxu1 %v4060_v4  ;;  %3558 = vmatprep.subr.bf16.mxu0 %v4060_v4  ;;  %v1187_v10 = vld [vmem:[%s1160_s16] sm:$0xff]  ;;  %v1188_v11 = vld [vmem:[%s1160_s16 + $0x8] sm:$0xff]  ;;  %v1321_v15 = vsel %vm1319_vm2, %v1314_v9, 0  ;;  %s1170_s26 = scalar_lea.vmem %s4995_s13, %s4315_s4  ;;  %v1444_v31 = vpack.c.bf16 %v1441_v30, %v1440_v28  ;;  %v1497_v60 = vld [vmem:[%s4989_s12 + $0x18] sm:$0xff]  ;;  %s4998_s16 = sld [smem:[#allocation15_spill]] }
  0x62   : > { %v1248_v12 = vld [vmem:[%s1165_s15] sm:$0xff]  ;;  %v1190_v13 = vpack.c.bf16 %v1188_v11, %v1187_v10  ;;  %v1249_v14 = vld [vmem:[%s1165_s15 + $0x8] sm:$0xff]  ;;  %v1499_v63 = vpack.c.bf16 %v1497_v60, %v1496_v59  ;;  %s4999_s15 = sld [smem:[#allocation16_spill]]  ;;  %s4955_s9 = sshll.u32 %s4795_s8, 4 }
  0x63   : > { %v1252_v16 = vpack.c.bf16 %v1249_v14, %v1248_v12  ;;  %v1310_v17 = vld [vmem:[%s1170_s26] sm:$0xff]  ;;  %v1311_v18 = vld [vmem:[%s1170_s26 + $0x8] sm:$0xff]  ;;  %s5000_s26 = sld [smem:[#allocation19_spill]] }
  0x64   : > { %3549 = vmatmul.mubr.msk.bf16.vlgmr.msra.gmra.mxu0 %vm1199_vm3, %v1190_v13  ;;  %v1313_v19 = vpack.c.bf16 %v1311_v18, %v1310_v17  ;;  %v3403_v32 = vld [vmem:[%s4094_s21] ss:$0 sm:$0xff]  ;;  %v1376_v56 = vld [vmem:[%s4099_s25 + $0x8] sm:$0xff]  ;;  %s5005_s5 = sld [smem:[#allocation24_spill]] }
  0x65   : > { %3555 = vmatmul.mubr.msk.bf16.vlgmr.msra.gmra.mxu1 %vm1254_vm4, %v1252_v16  ;;  %3559 = vmatpush3.bf16.msra.mxu0 %v1321_v15  ;;  %v3406_v40 = vld [vmem:[%s4996_s3] ss:$0 sm:$0xff]  ;;  %v1495_v2 = vld [vmem:[%s4989_s12 + $0x8] sm:$0xff]  ;;  %s5001_s3 = sld [smem:[#allocation18_spill]] }
  0x66   : > { %3560 = vmatprep.mubr.msk.bf16.mxu0 %vm4061_vm1, %v4060_v4  ;;  %3572 = vmatprep.subr.bf16.mxu0 %v4060_v4  ;;  %v3408_v49 = vld [vmem:[%s4997_s14] ss:$0 sm:$0xff]  ;;  %s5016_s6 = sld [smem:[#allocation34_spill]]  ;;  %s4062_s14 = smov [#allocation3]  }
  0x67   : > { %3568 = vmatprep.mubr.msk.bf16.mxu1 %vm4061_vm1, %v4060_v4  ;;  %3565 = vmatpush3.bf16.msra.mxu1 %v1385_v23  ;;  %v1375_v55 = vld [vmem:[%s4099_s25] sm:$0xff] }
  0x68   : > { %3566 = vmatprep.subr.bf16.mxu1 %v4060_v4  ;;  %v1494_v1 = vld [vmem:[%s4989_s12] sm:$0xff] }
  0x69   : > { %v1498_v3 = vpack.c.bf16 %v1495_v2, %v1494_v1  ;;  %v3409_v5 = vld [vmem:[%s4998_s16] ss:$0 sm:$0xff]  ;;  %v3417_v14 = vld [vmem:[%s5000_s26 + $0x1] ss:$0 sm:$0xff]  ;;  %v3421_v17 = vld [vmem:[%s5000_s26 + $0x2] ss:$0 sm:$0xff] }
  0x6a   : > { %v3411_v9 = vld [vmem:[%s4999_s15] ss:$0 sm:$0xff]  ;;  %v3424_v18 = vld [vmem:[%s5000_s26 + $0x3] ss:$0 sm:$0xff]  ;;  %v3430_v23 = vld [vmem:[%s5000_s26 + $0x5] ss:$0 sm:$0xff] }
  0x6b   : > { %3567 = vmatpush3.bf16.msra.mxu1 %v1384_v29  ;;  %v3415_v13 = vld [vmem:[%s5000_s26] ss:$0 sm:$0xff]  ;;  %v4380_v24 = vld [vmem:[%s5000_s26 + $0x6] ss:$0 sm:$0xff]  ;;  %s5003_s16 = sld [smem:[#allocation20_spill]] }
  0x6c   : > { %3561 = vmatmul.mubr.msk.bf16.vlgmr.msra.gmra.mxu0 %vm1315_vm5, %v1313_v19  ;;  %3580 = vmatprep.subr.bf16.mxu1 %v4060_v4  ;;  %v3427_v19 = vld [vmem:[%s5000_s26 + $0x4] ss:$0 sm:$0xff]  ;;  %v3413_v28 = vld [vmem:[%s5001_s3] ss:$0 sm:$0xff]  ;;  %s5002_s3 = sld [smem:[#allocation22_spill]]  ;;  %s1180_s12 = scalar_lea.vmem %s5016_s6, %s4315_s4 }
  0x6d   : > { %3576 = vmatprep.mubr.msk.bf16.mxu0 %vm4061_vm1, %v4060_v4  ;;  %3573 = vmatpush3.bf16.msra.mxu0 %v1445_v25  ;;  %v4383_v25 = vld [vmem:[%s5000_s26 + $0x7] ss:$0 sm:$0xff]  ;;  %s5004_s15 = sld [smem:[#allocation21_spill]]  ;;  %s3098_s6 = scalar_lea.sflag [#allocation4], %s4795_s8 }
  0x6e   : > { %3574 = vmatprep.subr.bf16.mxu0 %v4060_v4 }
  0x71   : > { %3575 = vmatpush3.bf16.msra.mxu0 %v1444_v31 }
  0x72   : > { %3588 = vmatprep.subr.bf16.mxu0 %v4060_v4 }
 0x124   : > { %v1241_v33 = vpop.f32.mrf.mxu0 }
 0x125   : > { %v1242_v34 = vadd.f32 %v3403_v32, %v1241_v33  ;;  %v1292_v35 = vpop.f32.mrf.mxu1 }
 0x126   : > { %v3550_v36 = vpop.f32.mrf.mxu0 }
 0x127   : > { %v1299_v37 = vadd.f32 %v1292_v35, %v1242_v34  ;;  %v3556_v38 = vpop.f32.mrf.mxu1 }
 0x128   : > { %v1244_v39 = vpop.f32.mrf.mxu0 }
 0x129   : > { %v1245_v41 = vadd.f32 %v3403_v32, %v1244_v39  ;;  %v1295_v42 = vpop.f32.mrf.mxu1  ;;  %v1308_v46 = vadd.f32 %v3406_v40, %v1299_v37 }
 0x12a   : > { %v3551_v43 = vpop.f32.mrf.mxu0 }
 0x12b   : > { %v1300_v44 = vadd.f32 %v1295_v42, %v1245_v41  ;;  %v3557_v45 = vpop.f32.mrf.mxu1 }
 0x12c   : > { %v1357_v47 = vpop.f32.mrf.mxu0 }
 0x12d   : > { %v1364_v48 = vadd.f32 %v1357_v47, %v1308_v46  ;;  %v1309_v51 = vadd.f32 %v3406_v40, %v1300_v44 }
 0x12e   : > { %v3562_v50 = vpop.f32.mrf.mxu0 }
 0x12f   : > { %v1373_v53 = vadd.f32 %v3408_v49, %v1364_v48 }
 0x130   : > { %v1360_v52 = vpop.f32.mrf.mxu0 }
 0x131   : > { %v1365_v54 = vadd.f32 %v1360_v52, %v1309_v51  ;;  %v4352_v61 = vadd.f32 %v1375_v55, %v1373_v53 }
 0x132   : > { %v3563_v57 = vpop.f32.mrf.mxu0 }
 0x133   : > { %v1374_v58 = vadd.f32 %v3408_v49, %v1365_v54 }
 0x135   : > { %v4354_v62 = vadd.f32 %v1376_v56, %v1374_v58 }
 0x137   : > { %v1383_v0 = vpack.c.bf16 %v4354_v62, %v4352_v61 }
 0x139   : > { %3569 = vmatmul.mubr.msk.bf16.vlgmr.msra.gmra.mxu1 %vm1393_vm6, %v1383_v0  ;;  %3577 = vmatmul.mubr.msk.bf16.vlgmr.msra.gmra.mxu0 %vm1393_vm6, %v1383_v0 }
 0x13a   : > { %3581 = vmatpush3.bf16.msra.mxu1 %v1499_v63  ;;  %3584 = vmatprep.mubr.msk.bf16.mxu1 %vm4061_vm1, %v4060_v4 }
 0x13b   : > { %3582 = vmatprep.subr.bf16.mxu1 %v4060_v4  ;;  %3590 = vmatprep.mubr.msk.bf16.mxu0 %vm4061_vm1, %v4060_v4 }
 0x13e   : > { %3583 = vmatpush3.bf16.msra.mxu1 %v1498_v3 }
 0x13f   : > { %3594 = vmatprep.subr.bf16.mxu1 %v4060_v4 }
 0x141   : > { %3585 = vmatmul.mubr.msk.bf16.vlgmr.msra.gmra.mxu1 %vm1393_vm6, %v1383_v0 }
 0x142   : > { %3596 = vmatprep.mubr.msk.bf16.mxu1 %vm4061_vm1, %v4060_v4 }
 0x1f9   : > { %v1431_v6 = vpop.f32.mrf.mxu1  ;;  %v1487_v7 = vpop.f32.mrf.mxu0 }
 0x1fa   : > { %v1432_v8 = vadd.f32 %v3409_v5, %v1431_v6  ;;  %v1488_v20 = vadd.f32 %v3411_v9, %v1487_v7 }
 0x1fb   : > { %v3570_v10 = vpop.f32.mrf.mxu1  ;;  %v3578_v11 = vpop.f32.mrf.mxu0 }
 0x1fc   : > { %v1438_v12 = vmul.f32 0.17677669, %v1432_v8 }
 0x1fd   : > { %v1434_v15 = vpop.f32.mrf.mxu1  ;;  %v1490_v16 = vpop.f32.mrf.mxu0 }
 0x1fe   : > { %v1435_v21 = vadd.f32 %v3409_v5, %v1434_v15  ;;  %v1491_v22 = vadd.f32 %v3411_v9, %v1490_v16  ;;  %v1553_v29 = vmul.f32 %v3415_v13, %v1438_v12  ;;  %v1635_v30 = vmul.f32 %v3417_v14, %v1438_v12 }
 0x1ff   : > { %v3571_v26 = vpop.f32.mrf.mxu1  ;;  %v3579_v27 = vpop.f32.mrf.mxu0  ;;  %v4386_v33 = vmul.f32 %v3421_v17, %v1438_v12  ;;  %v4388_v34 = vmul.f32 %v3424_v18, %v1438_v12  ;;  %v4390_v36 = vmul.f32 %v3427_v19, %v1438_v12  ;;  %v4392_v37 = vmul.f32 %v3430_v23, %v1438_v12 }
 0x200   : > { %v1439_v31 = vmul.f32 0.17677669, %v1435_v21  ;;  %v1556_v32 = vpack.c.bf16 %v1491_v22, %v1488_v20  ;;  %v4395_v38 = vmul.f32 %v4380_v24, %v1438_v12  ;;  %v4398_v39 = vmul.f32 %v4383_v25, %v1438_v12 }
 0x201   : > { %v1541_v35 = vpop.f32.mrf.mxu1 }
 0x202   : > { %v4401_v40 = vsel %vm1393_vm6, %v1556_v32, 0  ;;  %v1542_v41 = vadd.f32 %v3413_v28, %v1541_v35  ;;  %v1554_v42 = vmul.f32 %v3415_v13, %v1439_v31  ;;  %v1636_v43 = vmul.f32 %v3417_v14, %v1439_v31 }
 0x203   : > { %v3586_v44 = vpop.f32.mrf.mxu1  ;;  %3589 = vmatpush3.bf16.xpose.msra.mxu0 %v4401_v40  ;;  %3595 = vmatpush3.bf16.xpose.msra.mxu1 %v4401_v40  ;;  %v4405_v45 = vmul.f32 %v3421_v17, %v1439_v31  ;;  %v4407_v46 = vmul.f32 %v3424_v18, %v1439_v31  ;;  %v4409_v47 = vmul.f32 %v3427_v19, %v1439_v31 }
 0x204   : > { %v1555_v48 = vpack.c.bf16 %v1554_v42, %v1553_v29  ;;  %v1637_v49 = vpack.c.bf16 %v1636_v43, %v1635_v30  ;;  %3600 = vmatprep.subr.bf16.mxu0 %v4060_v4  ;;  %3606 = vmatprep.subr.bf16.mxu1 %v4060_v4  ;;  %v1705_v50 = vmul.f32 %v3417_v14, %v1542_v41 }
 0x205   : > { %v1544_v51 = vpop.f32.mrf.mxu1  ;;  %v1627_v52 = vmul.f32 %v3415_v13, %v1542_v41  ;;  %v1803_v53 = vpack.c.bf16 %v4405_v45, %v4386_v33  ;;  %v1927_v54 = vpack.c.bf16 %v4407_v46, %v4388_v34  ;;  %v2051_v55 = vpack.c.bf16 %v4409_v47, %v4390_v36 }
 0x206   : > { %v1545_v56 = vadd.f32 %v3413_v28, %v1544_v51  ;;  %v4419_v57 = vmul.f32 %v3430_v23, %v1439_v31  ;;  %v4422_v58 = vmul.f32 %v4380_v24, %v1439_v31  ;;  %v4425_v59 = vmul.f32 %v4383_v25, %v1439_v31 }
 0x207   : > { %v3587_v60 = vpop.f32.mrf.mxu1  ;;  %v4427_v63 = vmul.f32 %v3421_v17, %v1542_v41  ;;  %v4429_v0 = vmul.f32 %v3424_v18, %v1542_v41  ;;  %v4431_v1 = vmul.f32 %v3427_v19, %v1542_v41  ;;  %v4433_v2 = vmul.f32 %v3430_v23, %v1542_v41 }
 0x208   : > { %v1706_v3 = vmul.f32 %v3417_v14, %v1545_v56  ;;  %v1628_v5 = vmul.f32 %v3415_v13, %v1545_v56  ;;  %v2175_v6 = vpack.c.bf16 %v4419_v57, %v4392_v37  ;;  %v2299_v7 = vpack.c.bf16 %v4422_v58, %v4395_v38 }
 0x209   : > { %v2423_v8 = vpack.c.bf16 %v4425_v59, %v4398_v39  ;;  %v4441_v9 = vmul.f32 %v3421_v17, %v1545_v56  ;;  %v4443_v10 = vmul.f32 %v3424_v18, %v1545_v56  ;;  %v4445_v11 = vmul.f32 %v3427_v19, %v1545_v56 }
 0x20a   : > { %3591 = vmatmul.mubr.msk.bf16.vlgmr.msra.gmra.mxu0 %vm1393_vm6, %v1555_v48  ;;  %3597 = vmatmul.mubr.msk.bf16.vlgmr.msra.gmra.mxu1 %vm1393_vm6, %v1637_v49  ;;  %v1707_v12 = vpack.c.bf16 %v1706_v3, %v1705_v50  ;;  %v1629_v13 = vpack.c.bf16 %v1628_v5, %v1627_v52  ;;  %v4449_v14 = vmul.f32 %v3430_v23, %v1545_v56 }
 0x20b   : > { %3602 = vmatprep.mubr.msk.bf16.mxu0 %vm4061_vm1, %v4060_v4  ;;  %3608 = vmatprep.mubr.msk.bf16.mxu1 %vm4061_vm1, %v4060_v4  ;;  %v1873_v15 = vpack.c.bf16 %v4441_v9, %v4427_v63  ;;  %v1997_v16 = vpack.c.bf16 %v4443_v10, %v4429_v0  ;;  %v2121_v17 = vpack.c.bf16 %v4445_v11, %v4431_v1 }
 0x20c   : > { %3601 = vmatpush3.bf16.msra.mxu0 %v1707_v12  ;;  %3607 = vmatpush3.bf16.msra.mxu1 %v1629_v13  ;;  %v2245_v18 = vpack.c.bf16 %v4449_v14, %v4433_v2  ;;  %v4464_v19 = vmul.f32 %v4380_v24, %v1542_v41  ;;  %v4467_v20 = vmul.f32 %v4380_v24, %v1545_v56 }
 0x20d   : > { %3612 = vmatprep.subr.bf16.mxu0 %v4060_v4  ;;  %3618 = vmatprep.subr.bf16.mxu1 %v4060_v4  ;;  %v4472_v21 = vmul.f32 %v4383_v25, %v1542_v41  ;;  %v4475_v22 = vmul.f32 %v4383_v25, %v1545_v56 }
 0x20e   : > { %v2369_v23 = vpack.c.bf16 %v4467_v20, %v4464_v19 }
 0x20f   : > { %v2493_v26 = vpack.c.bf16 %v4475_v22, %v4472_v21 }
 0x2ca   : > { %v4481_v27 = vpop.f32.mrf.mxu0  ;;  %v1675_v24 = vpop.f32.mrf.mxu1 }
 0x2cb   : > { %v1682_v28 = vsel %vm1254_vm4, %v1675_v24, -inf  ;;  %v1604_v42 = vsel %vm1254_vm4, %v4481_v27, -inf }
 0x2cc   : > { %1683 = vmax.xlane.f32.xlu0 %v1682_v28  ;;  %v3592_v29 = vpop.f32.mrf.mxu0  ;;  %v3598_v30 = vpop.f32.mrf.mxu1 }
 0x2ce   : > { %v4484_v31 = vpop.f32.mrf.mxu0  ;;  %v1678_v32 = vpop.f32.mrf.mxu1 }
 0x2cf   : > { %v1685_v25 = vsel %vm1254_vm4, %v1678_v32, -inf  ;;  %v1607_v5 = vsel %vm1254_vm4, %v4484_v31, -inf }
 0x2d0   : > { %1686 = vmax.xlane.f32.xlu0 %v1685_v25  ;;  %v3593_v35 = vpop.f32.mrf.mxu0  ;;  %v3599_v41 = vpop.f32.mrf.mxu1 }
 0x2d4   : > { %1605 = vmax.xlane.f32.xlu0 %v1604_v42 }
 0x355   : > { %v1684_v43 = vpop.xlane.xlu0 %1683 }
 0x356   : > { %v1688_v44 = vsub.f32 %v1675_v24, %v1684_v43 }
 0x358   : > { %v1690_v48 = vmul.f32 1.442695, %v1688_v44 }
 0x359   : > { %v1687_v49 = vpop.xlane.xlu0 %1686 }
 0x35a   : > { %3840 = vpow2.f32 %v1690_v48  ;;  %v1689_v50 = vsub.f32 %v1678_v32, %v1687_v49 }
 0x35c   : > { %v1692_v51 = vmul.f32 1.442695, %v1689_v50 }
 0x35e   : > { %3842 = vpow2.f32 %v1692_v51 }
 0x367   : > { %v3841_v52 = vpop.eup %3840 }
 0x368   : > { %v1694_v56 = vsel %vm1254_vm4, %v3841_v52, 0.0 }
 0x369   : > { %1695 = vadd.xlane.f32.xlu1 %v1694_v56 }
 0x36b   : > { %v3843_v60 = vpop.eup %3842 }
 0x36c   : > { %v1697_v3 = vsel %vm1254_vm4, %v3843_v60, 0.0 }
 0x36d   : > { %1698 = vadd.xlane.f32.xlu1 %v1697_v3 }
 0x371   : > { %1608 = vmax.xlane.f32.xlu1 %v1607_v5 }
 0x3f2   : > { %v1696_v12 = vpop.xlane.xlu1 %1695 }
 0x3f3   : > { %3844 = vrcp.f32 %v1696_v12 }
 0x3f6   : > { %v1699_v13 = vpop.xlane.xlu1 %1698 }
 0x3f7   : > { %3846 = vrcp.f32 %v1699_v13 }
 0x3fa   : > { %v1609_v43 = vpop.xlane.xlu1 %1608 }
 0x3fb   : > { %v1611_v50 = vsub.f32 %v4484_v31, %v1609_v43 }
 0x400   : > { %v3845_v24 = vpop.eup %3844 }
 0x401   : > { %v1702_v29 = vmul.f32 %v3845_v24, %v3841_v52 }
 0x404   : > { %v3847_v28 = vpop.eup %3846 }
 0x405   : > { %v1703_v30 = vmul.f32 %v3847_v28, %v3843_v60 }
 0x407   : > { %v1704_v32 = vpack.c.bf16 %v1703_v30, %v1702_v29 }
 0x409   : > { %3603 = vmatmul.mubr.msk.bf16.vlgmr.msra.gmra.mxu0 %vm1254_vm4, %v1704_v32 }
 0x40a   : > { %3613 = vmatpush3.bf16.xpose.msra.mxu0 %v4401_v40  ;;  %3614 = vmatprep.mubr.msk.bf16.mxu0 %vm4061_vm1, %v4060_v4 }
 0x40b   : > { %3624 = vmatprep.subr.bf16.mxu0 %v4060_v4 }
 0x411   : > { %3615 = vmatmul.mubr.msk.bf16.vlgmr.msra.gmra.mxu0 %vm1393_vm6, %v1803_v53 }
 0x412   : > { %3625 = vmatpush3.bf16.xpose.msra.mxu0 %v4401_v40  ;;  %3626 = vmatprep.mubr.msk.bf16.mxu0 %vm4061_vm1, %v4060_v4 }
 0x413   : > { %3636 = vmatprep.subr.bf16.mxu0 %v4060_v4 }
 0x419   : > { %3627 = vmatmul.mubr.msk.bf16.vlgmr.msra.gmra.mxu0 %vm1393_vm6, %v1927_v54 }
 0x41a   : > { %3637 = vmatpush3.bf16.xpose.msra.mxu0 %v4401_v40  ;;  %3638 = vmatprep.mubr.msk.bf16.mxu0 %vm4061_vm1, %v4060_v4 }
 0x41b   : > { %3648 = vmatprep.subr.bf16.mxu0 %v4060_v4 }
 0x421   : > { %3639 = vmatmul.mubr.msk.bf16.vlgmr.msra.gmra.mxu0 %vm1393_vm6, %v2051_v55 }
 0x422   : > { %3649 = vmatpush3.bf16.xpose.msra.mxu0 %v4401_v40  ;;  %3650 = vmatprep.mubr.msk.bf16.mxu0 %vm4061_vm1, %v4060_v4 }
 0x423   : > { %3660 = vmatprep.subr.bf16.mxu0 %v4060_v4 }
 0x429   : > { %3651 = vmatmul.mubr.msk.bf16.vlgmr.msra.gmra.mxu0 %vm1393_vm6, %v2175_v6 }
 0x42a   : > { %3661 = vmatpush3.bf16.xpose.msra.mxu0 %v4401_v40  ;;  %3662 = vmatprep.mubr.msk.bf16.mxu0 %vm4061_vm1, %v4060_v4 }
 0x42b   : > { %3672 = vmatprep.subr.bf16.mxu0 %v4060_v4 }
 0x431   : > { %3663 = vmatmul.mubr.msk.bf16.vlgmr.msra.gmra.mxu0 %vm1393_vm6, %v2299_v7 }
 0x432   : > { %3673 = vmatpush3.bf16.xpose.msra.mxu0 %v4401_v40  ;;  %3674 = vmatprep.mubr.msk.bf16.mxu0 %vm4061_vm1, %v4060_v4 }
 0x433   : > { %3684 = vmatprep.subr.bf16.mxu0 %v4060_v4 }
 0x439   : > { %3675 = vmatmul.mubr.msk.bf16.vlgmr.msra.gmra.mxu0 %vm1393_vm6, %v2423_v8  ;;  %v1606_v8 = vpop.xlane.xlu0 %1605 }
 0x43a   : > { %3688 = vmatprep.mubr.msk.bf16.mxu0 %vm4061_vm1, %v4060_v4  ;;  %v1610_v41 = vsub.f32 %v4481_v27, %v1606_v8  ;;  %v1614_v27 = vmul.f32 1.442695, %v1611_v50 }
 0x43c   : > { %v1612_v49 = vmul.f32 1.442695, %v1610_v41 }
 0x43e   : > { %3848 = vpow2.f32 %v1612_v49 }
 0x43f   : > { %3850 = vpow2.f32 %v1614_v27 }
 0x44b   : > { %v4594_v32 = vpop.eup %3848 }
 0x4c9   : > { %v4544_v33 = vpop.f32.mrf.mxu0 }
 0x4cb   : > { %v3604_v34 = vpop.f32.mrf.mxu0 }
 0x4cd   : > { %v4546_v36 = vpop.f32.mrf.mxu0 }
 0x4cf   : > { %v3605_v37 = vpop.f32.mrf.mxu0 }
 0x4d1   : > { %v4548_v38 = vpop.f32.mrf.mxu0 }
 0x4d2   : > { %v1848_v40 = vsel %vm1254_vm4, %v4548_v38, -inf }
 0x4d3   : > { %1849 = vmax.xlane.f32.xlu0 %v1848_v40  ;;  %v3616_v45 = vpop.f32.mrf.mxu0  ;;  %v1616_v40 = vsel %vm1254_vm4, %v4594_v32, 0.0 }
 0x4d5   : > { %v4552_v46 = vpop.f32.mrf.mxu0 }
 0x4d6   : > { %v1851_v39 = vsel %vm1254_vm4, %v4552_v46, -inf }
 0x4d7   : > { %1852 = vmax.xlane.f32.xlu1 %v1851_v39  ;;  %v3617_v47 = vpop.f32.mrf.mxu0  ;;  %v4602_v39 = vpop.eup %3850 }
 0x4d9   : > { %v4556_v53 = vpop.f32.mrf.mxu0 }
 0x4da   : > { %v1972_v54 = vsel %vm1254_vm4, %v4556_v53, -inf }
 0x4db   : > { %1973 = vmax.xlane.f32.xlu0 %v1972_v54  ;;  %v3628_v55 = vpop.f32.mrf.mxu0  ;;  %v1619_v54 = vsel %vm1254_vm4, %v4602_v39, 0.0 }
 0x4dd   : > { %v4560_v57 = vpop.f32.mrf.mxu0 }
 0x4de   : > { %v1975_v58 = vsel %vm1254_vm4, %v4560_v57, -inf }
 0x4df   : > { %1976 = vmax.xlane.f32.xlu1 %v1975_v58  ;;  %v3629_v59 = vpop.f32.mrf.mxu0 }
 0x4e1   : > { %v4564_v6 = vpop.f32.mrf.mxu0 }
 0x4e2   : > { %v2096_v7 = vsel %vm1254_vm4, %v4564_v6, -inf }
 0x4e3   : > { %2097 = vmax.xlane.f32.xlu0 %v2096_v7  ;;  %v3640_v25 = vpop.f32.mrf.mxu0 }
 0x4e5   : > { %v4568_v35 = vpop.f32.mrf.mxu0 }
 0x4e6   : > { %v2099_v42 = vsel %vm1254_vm4, %v4568_v35, -inf }
 0x4e7   : > { %2100 = vmax.xlane.f32.xlu1 %v2099_v42  ;;  %v3641_v44 = vpop.f32.mrf.mxu0 }
 0x4e9   : > { %v4573_v48 = vpop.f32.mrf.mxu0 }
 0x4ea   : > { %v2220_v51 = vsel %vm1254_vm4, %v4573_v48, -inf }
 0x4eb   : > { %2221 = vmax.xlane.f32.xlu0 %v2220_v51  ;;  %v3652_v52 = vpop.f32.mrf.mxu0 }
 0x4ed   : > { %v4578_v56 = vpop.f32.mrf.mxu0 }
 0x4ee   : > { %v2223_v60 = vsel %vm1254_vm4, %v4578_v56, -inf }
 0x4ef   : > { %2224 = vmax.xlane.f32.xlu1 %v2223_v60  ;;  %v3653_v3 = vpop.f32.mrf.mxu0 }
 0x4f1   : > { %v4582_v5 = vpop.f32.mrf.mxu0 }
 0x4f2   : > { %v2344_v31 = vsel %vm1254_vm4, %v4582_v5, -inf }
 0x4f3   : > { %2345 = vmax.xlane.f32.xlu0 %v2344_v31  ;;  %v3664_v12 = vpop.f32.mrf.mxu0 }
 0x4f5   : > { %v4586_v13 = vpop.f32.mrf.mxu0 }
 0x4f6   : > { %v2347_v24 = vsel %vm1254_vm4, %v4586_v13, -inf }
 0x4f7   : > { %2348 = vmax.xlane.f32.xlu1 %v2347_v24  ;;  %v3665_v28 = vpop.f32.mrf.mxu0 }
 0x4f9   : > { %v4590_v29 = vpop.f32.mrf.mxu0 }
 0x4fa   : > { %v2468_v30 = vsel %vm1254_vm4, %v4590_v29, -inf }
 0x4fb   : > { %2469 = vmax.xlane.f32.xlu0 %v2468_v30  ;;  %v3676_v34 = vpop.f32.mrf.mxu0 }
 0x4fd   : > { %v4596_v37 = vpop.f32.mrf.mxu0 }
 0x4fe   : > { %v2471_v45 = vsel %vm1254_vm4, %v4596_v37, -inf }
 0x4ff   : > { %1617 = vadd.xlane.f32.xlu0 %v1616_v40  ;;  %2472 = vmax.xlane.f32.xlu1 %v2471_v45  ;;  %v3677_v47 = vpop.f32.mrf.mxu0 }
 0x503   : > { %1620 = vadd.xlane.f32.xlu1 %v1619_v54 }
 0x55c   : > { %v1850_v55 = vpop.xlane.xlu0 %1849 }
 0x55d   : > { %v1854_v58 = vsub.f32 %v4548_v38, %v1850_v55 }
 0x55f   : > { %v1856_v59 = vmul.f32 1.442695, %v1854_v58 }
 0x560   : > { %v1853_v7 = vpop.xlane.xlu1 %1852 }
 0x561   : > { %3852 = vpow2.f32 %v1856_v59  ;;  %v1855_v8 = vsub.f32 %v4552_v46, %v1853_v7 }
 0x563   : > { %v1858_v25 = vmul.f32 1.442695, %v1855_v8 }
 0x564   : > { %v1974_v41 = vpop.xlane.xlu0 %1973 }
 0x565   : > { %3854 = vpow2.f32 %v1858_v25  ;;  %v1978_v42 = vsub.f32 %v4556_v53, %v1974_v41 }
 0x567   : > { %v1980_v43 = vmul.f32 1.442695, %v1978_v42 }
 0x568   : > { %v1977_v44 = vpop.xlane.xlu1 %1976 }
 0x569   : > { %3856 = vpow2.f32 %v1980_v43  ;;  %v1979_v49 = vsub.f32 %v4560_v57, %v1977_v44 }
 0x56b   : > { %v1982_v50 = vmul.f32 1.442695, %v1979_v49 }
 0x56c   : > { %v2098_v51 = vpop.xlane.xlu0 %2097 }
 0x56d   : > { %3858 = vpow2.f32 %v1982_v50  ;;  %v2102_v38 = vsub.f32 %v4564_v6, %v2098_v51 }
 0x56e   : > { %v4611_v52 = vpop.eup %3852 }
 0x56f   : > { %v2104_v27 = vmul.f32 1.442695, %v2102_v38  ;;  %v1860_v46 = vsel %vm1254_vm4, %v4611_v52, 0.0 }
 0x570   : > { %v2101_v60 = vpop.xlane.xlu1 %2100  ;;  %1861 = vadd.xlane.f32.xlu0 %v1860_v46 }
 0x571   : > { %3860 = vpow2.f32 %v2104_v27  ;;  %v2103_v53 = vsub.f32 %v4568_v35, %v2101_v60 }
 0x572   : > { %v4616_v3 = vpop.eup %3854 }
 0x573   : > { %v2106_v31 = vmul.f32 1.442695, %v2103_v53  ;;  %v1863_v57 = vsel %vm1254_vm4, %v4616_v3, 0.0 }
 0x574   : > { %v2222_v12 = vpop.xlane.xlu0 %2221  ;;  %1864 = vadd.xlane.f32.xlu1 %v1863_v57 }
 0x575   : > { %3862 = vpow2.f32 %v2106_v31  ;;  %v2226_v6 = vsub.f32 %v4573_v48, %v2222_v12 }
 0x576   : > { %v4621_v24 = vpop.eup %3856 }
 0x577   : > { %v2228_v28 = vmul.f32 1.442695, %v2226_v6  ;;  %v1984_v30 = vsel %vm1254_vm4, %v4621_v24, 0.0 }
 0x578   : > { %v2225_v34 = vpop.xlane.xlu1 %2224  ;;  %1985 = vadd.xlane.f32.xlu0 %v1984_v30 }
 0x579   : > { %3864 = vpow2.f32 %v2228_v28  ;;  %v2227_v35 = vsub.f32 %v4578_v56, %v2225_v34 }
 0x57a   : > { %v4626_v40 = vpop.eup %3858 }
 0x57b   : > { %v2230_v45 = vmul.f32 1.442695, %v2227_v35  ;;  %v1987_v47 = vsel %vm1254_vm4, %v4626_v40, 0.0 }
 0x57c   : > { %v2346_v54 = vpop.xlane.xlu0 %2345  ;;  %1988 = vadd.xlane.f32.xlu1 %v1987_v47 }
 0x57d   : > { %3866 = vpow2.f32 %v2230_v45  ;;  %v2350_v48 = vsub.f32 %v4582_v5, %v2346_v54 }
 0x57e   : > { %v4631_v55 = vpop.eup %3860 }
 0x57f   : > { %v2352_v58 = vmul.f32 1.442695, %v2350_v48  ;;  %v2108_v59 = vsel %vm1254_vm4, %v4631_v55, 0.0 }
 0x580   : > { %v2349_v7 = vpop.xlane.xlu1 %2348  ;;  %2109 = vadd.xlane.f32.xlu0 %v2108_v59 }
 0x581   : > { %3868 = vpow2.f32 %v2352_v58  ;;  %v2351_v56 = vsub.f32 %v4586_v13, %v2349_v7 }
 0x582   : > { %v4636_v8 = vpop.eup %3862 }
 0x583   : > { %v2354_v25 = vmul.f32 1.442695, %v2351_v56  ;;  %v2111_v41 = vsel %vm1254_vm4, %v4636_v8, 0.0 }
 0x584   : > { %v2470_v42 = vpop.xlane.xlu0 %2469  ;;  %2112 = vadd.xlane.f32.xlu1 %v2111_v41 }
 0x585   : > { %3870 = vpow2.f32 %v2354_v25  ;;  %v2474_v5 = vsub.f32 %v4590_v29, %v2470_v42 }
 0x586   : > { %v4641_v43 = vpop.eup %3864 }
 0x587   : > { %v2476_v44 = vmul.f32 1.442695, %v2474_v5  ;;  %v2232_v49 = vsel %vm1254_vm4, %v4641_v43, 0.0 }
 0x588   : > { %2233 = vadd.xlane.f32.xlu0 %v2232_v49  ;;  %v2473_v50 = vpop.xlane.xlu1 %2472  ;;  %v1618_v13 = vpop.xlane.xlu0 %1617 }
 0x589   : > { %3872 = vpow2.f32 %v2476_v44  ;;  %v2475_v51 = vsub.f32 %v4596_v37, %v2473_v50 }
 0x58a   : > { %v4646_v38 = vpop.eup %3866  ;;  %3874 = vrcp.f32 %v1618_v13 }
 0x58b   : > { %v2478_v27 = vmul.f32 1.442695, %v2475_v51  ;;  %v2235_v46 = vsel %vm1254_vm4, %v4646_v38, 0.0 }
 0x58c   : > { %2236 = vadd.xlane.f32.xlu1 %v2235_v46  ;;  %v1621_v29 = vpop.xlane.xlu1 %1620 }
 0x58d   : > { %3876 = vpow2.f32 %v2478_v27 }
 0x58e   : > { %v4650_v60 = vpop.eup %3868  ;;  %3878 = vrcp.f32 %v1621_v29 }
 0x58f   : > { %v2356_v53 = vsel %vm1254_vm4, %v4650_v60, 0.0 }
 0x590   : > { %2357 = vadd.xlane.f32.xlu0 %v2356_v53 }
 0x592   : > { %v4654_v31 = vpop.eup %3870 }
 0x593   : > { %v2359_v37 = vsel %vm1254_vm4, %v4654_v31, 0.0 }
 0x594   : > { %2360 = vadd.xlane.f32.xlu1 %v2359_v37 }
 0x596   : > { %v4658_v57 = vpop.eup %3872 }
 0x597   : > { %v2480_v12 = vsel %vm1254_vm4, %v4658_v57, 0.0  ;;  %v3875_v6 = vpop.eup %3874 }
 0x598   : > { %2481 = vadd.xlane.f32.xlu0 %v2480_v12  ;;  %v1624_v35 = vmul.f32 %v3875_v6, %v4594_v32 }
 0x59a   : > { %v4662_v28 = vpop.eup %3876 }
 0x59b   : > { %v3879_v30 = vpop.eup %3878  ;;  %v2483_v34 = vsel %vm1254_vm4, %v4662_v28, 0.0 }
 0x59c   : > { %2484 = vadd.xlane.f32.xlu1 %v2483_v34  ;;  %v1625_v45 = vmul.f32 %v3879_v30, %v4602_v39 }
 0x59e   : > { %v1626_v47 = vpack.c.bf16 %v1625_v45, %v1624_v35 }
 0x5a0   : > { %3609 = vmatmul.mubr.msk.bf16.vlgmr.msra.gmra.mxu1 %vm1254_vm4, %v1626_v47 }
 0x5a1   : > { %3619 = vmatpush3.bf16.msra.mxu1 %v1873_v15  ;;  %3620 = vmatprep.mubr.msk.bf16.mxu1 %vm4061_vm1, %v4060_v4 }
 0x5a2   : > { %3630 = vmatprep.subr.bf16.mxu1 %v4060_v4 }
 0x5f9   : > { %v1862_v54 = vpop.xlane.xlu0 %1861 }
 0x5fa   : > { %3880 = vrcp.f32 %v1862_v54 }
 0x5fd   : > { %v1865_v48 = vpop.xlane.xlu1 %1864 }
 0x5fe   : > { %3882 = vrcp.f32 %v1865_v48 }
 0x601   : > { %v1986_v58 = vpop.xlane.xlu0 %1985 }
 0x602   : > { %3884 = vrcp.f32 %v1986_v58 }
 0x605   : > { %v1989_v32 = vpop.xlane.xlu1 %1988 }
 0x606   : > { %3886 = vrcp.f32 %v1989_v32 }
 0x607   : > { %v3881_v39 = vpop.eup %3880 }
 0x608   : > { %v1868_v63 = vmul.f32 %v3881_v39, %v4611_v52 }
 0x609   : > { %v2110_v59 = vpop.xlane.xlu0 %2109 }
 0x60a   : > { %3888 = vrcp.f32 %v2110_v59 }
 0x60b   : > { %v3883_v7 = vpop.eup %3882 }
 0x60c   : > { %v1869_v9 = vmul.f32 %v3883_v7, %v4616_v3 }
 0x60d   : > { %v2113_v15 = vpop.xlane.xlu1 %2112 }
 0x60e   : > { %3890 = vrcp.f32 %v2113_v15  ;;  %v1870_v56 = vpack.c.bf16 %v1869_v9, %v1868_v63 }
 0x60f   : > { %v3885_v25 = vpop.eup %3884 }
 0x610   : > { %3621 = vmatmul.mubr.msk.bf16.vlgmr.msra.gmra.mxu1 %vm1254_vm4, %v1870_v56  ;;  %v1992_v52 = vmul.f32 %v3885_v25, %v4621_v24 }
 0x611   : > { %3631 = vmatpush3.bf16.msra.mxu1 %v1997_v16  ;;  %v2234_v41 = vpop.xlane.xlu0 %2233  ;;  %3632 = vmatprep.mubr.msk.bf16.mxu1 %vm4061_vm1, %v4060_v4 }
 0x612   : > { %3642 = vmatprep.subr.bf16.mxu1 %v4060_v4  ;;  %3892 = vrcp.f32 %v2234_v41 }
 0x613   : > { %v3887_v42 = vpop.eup %3886 }
 0x614   : > { %v1993_v3 = vmul.f32 %v3887_v42, %v4626_v40 }
 0x615   : > { %v2237_v5 = vpop.xlane.xlu1 %2236 }
 0x616   : > { %3894 = vrcp.f32 %v2237_v5  ;;  %v1994_v44 = vpack.c.bf16 %v1993_v3, %v1992_v52 }
 0x617   : > { %v3889_v49 = vpop.eup %3888 }
 0x618   : > { %3633 = vmatmul.mubr.msk.bf16.vlgmr.msra.gmra.mxu1 %vm1254_vm4, %v1994_v44  ;;  %v2116_v16 = vmul.f32 %v3889_v49, %v4631_v55 }
 0x619   : > { %3643 = vmatpush3.bf16.msra.mxu1 %v2121_v17  ;;  %v2358_v0 = vpop.xlane.xlu0 %2357  ;;  %3644 = vmatprep.mubr.msk.bf16.mxu1 %vm4061_vm1, %v4060_v4 }
 0x61a   : > { %3654 = vmatprep.subr.bf16.mxu1 %v4060_v4  ;;  %3896 = vrcp.f32 %v2358_v0 }
 0x61b   : > { %v3891_v10 = vpop.eup %3890 }
 0x61c   : > { %v2117_v24 = vmul.f32 %v3891_v10, %v4636_v8 }
 0x61d   : > { %v2361_v40 = vpop.xlane.xlu1 %2360 }
 0x61e   : > { %3898 = vrcp.f32 %v2361_v40  ;;  %v2118_v50 = vpack.c.bf16 %v2117_v24, %v2116_v16 }
 0x61f   : > { %v3893_v13 = vpop.eup %3892 }
 0x620   : > { %3645 = vmatmul.mubr.msk.bf16.vlgmr.msra.gmra.mxu1 %vm1254_vm4, %v2118_v50  ;;  %v2240_v17 = vmul.f32 %v3893_v13, %v4641_v43 }
 0x621   : > { %3655 = vmatpush3.bf16.msra.mxu1 %v2245_v18  ;;  %v2482_v1 = vpop.xlane.xlu0 %2481  ;;  %3656 = vmatprep.mubr.msk.bf16.mxu1 %vm4061_vm1, %v4060_v4 }
 0x622   : > { %3666 = vmatprep.subr.bf16.mxu1 %v4060_v4  ;;  %3900 = vrcp.f32 %v2482_v1 }
 0x623   : > { %v3895_v11 = vpop.eup %3894 }
 0x624   : > { %v2241_v55 = vmul.f32 %v3895_v11, %v4646_v38 }
 0x625   : > { %v2485_v8 = vpop.xlane.xlu1 %2484 }
 0x626   : > { %3902 = vrcp.f32 %v2485_v8  ;;  %v2242_v51 = vpack.c.bf16 %v2241_v55, %v2240_v17 }
 0x627   : > { %v3897_v27 = vpop.eup %3896 }
 0x628   : > { %3657 = vmatmul.mubr.msk.bf16.vlgmr.msra.gmra.mxu1 %vm1254_vm4, %v2242_v51  ;;  %v2364_v14 = vmul.f32 %v3897_v27, %v4650_v60 }
 0x629   : > { %3667 = vmatpush3.bf16.msra.mxu1 %v2369_v23  ;;  %3668 = vmatprep.mubr.msk.bf16.mxu1 %vm4061_vm1, %v4060_v4 }
 0x62a   : > { %3678 = vmatprep.subr.bf16.mxu1 %v4060_v4 }
 0x62b   : > { %v3899_v2 = vpop.eup %3898 }
 0x62c   : > { %v2365_v18 = vmul.f32 %v3899_v2, %v4654_v31 }
 0x62e   : > { %v2366_v43 = vpack.c.bf16 %v2365_v18, %v2364_v14 }
 0x62f   : > { %v3901_v38 = vpop.eup %3900 }
 0x630   : > { %3669 = vmatmul.mubr.msk.bf16.vlgmr.msra.gmra.mxu1 %vm1254_vm4, %v2366_v43  ;;  %v2488_v20 = vmul.f32 %v3901_v38, %v4658_v57  ;;  %v2590_v43 = vld [vmem:[%s5002_s3 + $0x18] sm:$0xff]  ;;  %v2587_v38 = vld [vmem:[%s5002_s3] sm:$0xff] }
 0x631   : > { %3679 = vmatpush3.bf16.msra.mxu1 %v2493_v26  ;;  %3680 = vmatprep.mubr.msk.bf16.mxu1 %vm4061_vm1, %v4060_v4 }
 0x632   : > { %3692 = vmatprep.subr.bf16.mxu1 %v4060_v4 }
 0x633   : > { %v3903_v19 = vpop.eup %3902 }
 0x634   : > { %v2489_v23 = vmul.f32 %v3903_v19, %v4662_v28 }
 0x636   : > { %v2490_v46 = vpack.c.bf16 %v2489_v23, %v2488_v20  ;;  %v2588_v20 = vld [vmem:[%s5002_s3 + $0x8] sm:$0xff] }
 0x637   : > { %v2592_v23 = vpack.c.bf16 %v2588_v20, %v2587_v38 }
 0x638   : > { %3681 = vmatmul.mubr.msk.bf16.vlgmr.msra.gmra.mxu1 %vm1254_vm4, %v2490_v46 }
 0x639   : > { %3696 = vmatprep.mubr.msk.bf16.mxu1 %vm4061_vm1, %v4060_v4 }
 0x660   : > { %v1789_v29 = vpop.f32.mrf.mxu1 }
 0x661   : > { %v1790_v58 = vadd.f32 %v1789_v29, %v4544_v33 }
 0x662   : > { %v3610_v60 = vpop.f32.mrf.mxu1 }
 0x664   : > { %v1792_v21 = vpop.f32.mrf.mxu1 }
 0x665   : > { %v1793_v7 = vadd.f32 %v1792_v21, %v4546_v36 }
 0x666   : > { %v3611_v22 = vpop.f32.mrf.mxu1 }
 0x6d0   : > { %v1911_v26 = vpop.f32.mrf.mxu1 }
 0x6d1   : > { %v1918_v39 = vadd.f32 %v1911_v26, %v1790_v58 }
 0x6d2   : > { %v3622_v53 = vpop.f32.mrf.mxu1 }
 0x6d4   : > { %v1914_v31 = vpop.f32.mrf.mxu1 }
 0x6d5   : > { %v1919_v15 = vadd.f32 %v1914_v31, %v1793_v7 }
 0x6d6   : > { %v3623_v37 = vpop.f32.mrf.mxu1 }
 0x6d7   : > { %v3439_v37 = vld [vmem:[%s5003_s16] ss:$0 sm:$0xff]  ;;  %s5007_s16 = sld [smem:[#allocation25_spill]] }
 0x6d8   : > { %v2035_v12 = vpop.f32.mrf.mxu1 }
 0x6d9   : > { %v2042_v63 = vadd.f32 %v2035_v12, %v1918_v39 }
 0x6da   : > { %v3634_v6 = vpop.f32.mrf.mxu1 }
 0x6dc   : > { %v2038_v30 = vpop.f32.mrf.mxu1 }
 0x6dd   : > { %v2043_v41 = vadd.f32 %v2038_v30, %v1919_v15 }
 0x6de   : > { %v3635_v57 = vpop.f32.mrf.mxu1 }
 0x6df   : > { %v3440_v57 = vld [vmem:[%s5004_s15] ss:$0 sm:$0xff]  ;;  %s5009_s15 = sld [smem:[#allocation29_spill]] }
 0x6e0   : > { %v2159_v34 = vpop.f32.mrf.mxu1 }
 0x6e1   : > { %v2166_v56 = vadd.f32 %v2159_v34, %v2042_v63 }
 0x6e2   : > { %v3646_v28 = vpop.f32.mrf.mxu1 }
 0x6e4   : > { %v2162_v35 = vpop.f32.mrf.mxu1 }
 0x6e5   : > { %v2167_v3 = vadd.f32 %v2162_v35, %v2043_v41 }
 0x6e6   : > { %v3647_v45 = vpop.f32.mrf.mxu1 }
 0x6e8   : > { %v2283_v47 = vpop.f32.mrf.mxu1 }
 0x6e9   : > { %v2290_v42 = vadd.f32 %v2283_v47, %v2166_v56  ;;  %v2657_v47 = vld [vmem:[%s5005_s5 + $0x10] sm:$0xff] }
 0x6ea   : > { %v3658_v54 = vpop.f32.mrf.mxu1 }
 0x6eb   : > { %v2658_v54 = vld [vmem:[%s5005_s5 + $0x18] sm:$0xff] }
 0x6ec   : > { %v2286_v48 = vpop.f32.mrf.mxu1  ;;  %v2661_v58 = vpack.c.bf16 %v2658_v54, %v2657_v47 }
 0x6ed   : > { %v2291_v49 = vadd.f32 %v2286_v48, %v2167_v3  ;;  %v2655_v48 = vld [vmem:[%s5005_s5] sm:$0xff] }
 0x6ee   : > { %v3659_v32 = vpop.f32.mrf.mxu1  ;;  %3693 = vmatpush3.bf16.msra.mxu1 %v2661_v58 }
 0x6ef   : > { %v2656_v32 = vld [vmem:[%s5005_s5 + $0x8] sm:$0xff]  ;;  %3694 = vmatprep.subr.bf16.mxu1 %v4060_v4  ;;  %s5012_s5 = sld [smem:[#allocation31_spill]] }
 0x6f0   : > { %v2407_v59 = vpop.f32.mrf.mxu1  ;;  %v2660_v39 = vpack.c.bf16 %v2656_v32, %v2655_v48 }
 0x6f1   : > { %v2414_v5 = vadd.f32 %v2407_v59, %v2290_v42 }
 0x6f2   : > { %v3670_v9 = vpop.f32.mrf.mxu1  ;;  %3695 = vmatpush3.bf16.msra.mxu1 %v2660_v39 }
 0x6f3   : > { %3708 = vmatprep.subr.bf16.mxu1 %v4060_v4 }
 0x6f4   : > { %v2410_v25 = vpop.f32.mrf.mxu1 }
 0x6f5   : > { %v2415_v33 = vadd.f32 %v2410_v25, %v2291_v49 }
 0x6f6   : > { %v3671_v52 = vpop.f32.mrf.mxu1 }
 0x6f8   : > { %v2531_v44 = vpop.f32.mrf.mxu1 }
 0x6f9   : > { %v2538_v0 = vadd.f32 %v2531_v44, %v2414_v5 }
 0x6fa   : > { %v3682_v10 = vpop.f32.mrf.mxu1 }
 0x6fb   : > { %v2540_v16 = vadd.f32 %v2538_v0, %v4352_v61 }
 0x6fc   : > { %v2534_v24 = vpop.f32.mrf.mxu1 }
 0x6fd   : > { %v2539_v40 = vadd.f32 %v2534_v24, %v2415_v33  ;;  %v2544_v36 = vsel %vm1393_vm6, %v2540_v16, 0.0  ;;  %v3443_v24 = vld [vmem:[%s5007_s16] ss:$0 sm:$0xff]  ;;  %s5010_s16 = sld [smem:[#allocation26_spill]] }
 0x6fe   : > { %2545 = vadd.xlane.f32.xlu0 %v2544_v36  ;;  %v3683_v50 = vpop.f32.mrf.mxu1 }
 0x6ff   : > { %v2541_v13 = vadd.f32 %v2539_v40, %v4354_v62  ;;  %v2589_v62 = vld [vmem:[%s5002_s3 + $0x10] sm:$0xff]  ;;  %s5006_s3 = sld [smem:[#allocation23_spill]] }
 0x700   : > { %v2593_v19 = vpack.c.bf16 %v2590_v43, %v2589_v62 }
 0x701   : > { %v2547_v1 = vsel %vm1393_vm6, %v2541_v13, 0.0 }
 0x702   : > { %2548 = vadd.xlane.f32.xlu1 %v2547_v1  ;;  %3685 = vmatpush3.bf16.msra.mxu0 %v2593_v19 }
 0x703   : > { %3686 = vmatprep.subr.bf16.mxu0 %v4060_v4  ;;  %v3445_v39 = vld [vmem:[%s5010_s16] ss:$0 sm:$0xff]  ;;  %s5014_s16 = sld [smem:[#allocation33_spill]] }
 0x705   : > { %v3441_v59 = vld [vmem:[%s5006_s3] ss:$0 sm:$0xff]  ;;  %s5008_s3 = sld [smem:[#allocation28_spill]] }
 0x706   : > { %3687 = vmatpush3.bf16.msra.mxu0 %v2592_v23 }
 0x707   : > { %3700 = vmatprep.subr.bf16.mxu0 %v4060_v4 }
 0x70b   : > { %v2761_v23 = vld [vmem:[%s5008_s3 + $0x10] sm:$0xff] }
 0x787   : > { %v2546_v11 = vpop.xlane.xlu0 %2545 }
 0x788   : > { %v2551_v17 = vmul.f32 0.03125, %v2546_v11 }
 0x78a   : > { %v2553_v55 = vsub.f32 %v2540_v16, %v2551_v17 }
 0x78b   : > { %v2549_v8 = vpop.xlane.xlu1 %2548 }
 0x78c   : > { %v2552_v61 = vmul.f32 0.03125, %v2549_v8  ;;  %v2555_v51 = vmul.f32 %v2553_v55, %v2553_v55 }
 0x78e   : > { %v2554_v27 = vsub.f32 %v2541_v13, %v2552_v61  ;;  %v2557_v2 = vsel %vm1393_vm6, %v2555_v51, 0.0 }
 0x78f   : > { %2558 = vadd.xlane.f32.xlu0 %v2557_v2 }
 0x790   : > { %v2556_v14 = vmul.f32 %v2554_v27, %v2554_v27 }
 0x792   : > { %v2560_v18 = vsel %vm1393_vm6, %v2556_v14, 0.0 }
 0x793   : > { %2561 = vadd.xlane.f32.xlu1 %v2560_v18 }
 0x818   : > { %v2559_v46 = vpop.xlane.xlu0 %2558 }
 0x819   : > { %v2563_v29 = vmul.f32 0.03125, %v2559_v46  ;;  %v2762_v46 = vld [vmem:[%s5008_s3 + $0x18] sm:$0xff] }
 0x81b   : > { %v2565_v60 = vadd.f32 1e-05, %v2563_v29  ;;  %v2759_v29 = vld [vmem:[%s5008_s3] sm:$0xff] }
 0x81c   : > { %v2562_v21 = vpop.xlane.xlu1 %2561 }
 0x81d   : > { %3904 = vrsqrt.f32 %v2565_v60  ;;  %v2564_v22 = vmul.f32 0.03125, %v2562_v21  ;;  %v2765_v60 = vpack.c.bf16 %v2762_v46, %v2761_v23  ;;  %v2760_v21 = vld [vmem:[%s5008_s3 + $0x8] sm:$0xff]  ;;  %s5011_s3 = sld [smem:[#allocation27_spill]] }
 0x81f   : > { %v2566_v26 = vadd.f32 1e-05, %v2564_v22  ;;  %v2764_v22 = vpack.c.bf16 %v2760_v21, %v2759_v29  ;;  %v3023_v21 = vld [vmem:[%s5014_s16 + $0x18] sm:$0xff] }
 0x821   : > { %3906 = vrsqrt.f32 %v2566_v26  ;;  %v2819_v26 = vld [vmem:[%s5009_s15 + $0x30] sm:$0xff] }
 0x82a   : > { %v3905_v53 = vpop.eup %3904 }
 0x82b   : > { %v2569_v31 = vmul.f32 %v3905_v53, %v2553_v55  ;;  %v2820_v53 = vld [vmem:[%s5009_s15 + $0x38] sm:$0xff] }
 0x82d   : > { %v2577_v30 = vmul.f32 %v3439_v37, %v2569_v31  ;;  %v2825_v31 = vpack.c.bf16 %v2820_v53, %v2819_v26 }
 0x82e   : > { %v3907_v12 = vpop.eup %3906 }
 0x82f   : > { %v2570_v6 = vmul.f32 %v3907_v12, %v2554_v27  ;;  %v2585_v28 = vadd.f32 %v3440_v57, %v2577_v30  ;;  %v2818_v12 = vld [vmem:[%s5009_s15 + $0x28] sm:$0xff]  ;;  %v2815_v30 = vld [vmem:[%s5009_s15 + $0x10] sm:$0xff] }
 0x831   : > { %v2578_v34 = vmul.f32 %v3439_v37, %v2570_v6  ;;  %v2817_v37 = vld [vmem:[%s5009_s15 + $0x20] sm:$0xff] }
 0x832   : > { %v2824_v6 = vpack.c.bf16 %v2818_v12, %v2817_v37  ;;  %v3020_v37 = vld [vmem:[%s5014_s16] sm:$0xff]  ;;  %v3021_v12 = vld [vmem:[%s5014_s16 + $0x8] sm:$0xff] }
 0x833   : > { %v2586_v35 = vadd.f32 %v3440_v57, %v2578_v34  ;;  %v2816_v57 = vld [vmem:[%s5009_s15 + $0x18] sm:$0xff] }
 0x834   : > { %v2823_v34 = vpack.c.bf16 %v2816_v57, %v2815_v30  ;;  %v3028_v30 = vpack.c.bf16 %v3021_v12, %v3020_v37 }
 0x835   : > { %v2591_v45 = vpack.c.bf16 %v2586_v35, %v2585_v28 }
 0x837   : > { %3689 = vmatmul.mubr.msk.bf16.vlgmr.msra.gmra.mxu0 %vm1393_vm6, %v2591_v45 }
 0x838   : > { %3704 = vmatprep.mubr.msk.bf16.mxu0 %vm4061_vm1, %v4060_v4  ;;  %3701 = vmatpush3.bf16.msra.mxu0 %v2765_v60  ;;  %v3022_v60 = vld [vmem:[%s5014_s16 + $0x10] sm:$0xff] }
 0x839   : > { %3702 = vmatprep.subr.bf16.mxu0 %v4060_v4  ;;  %v3029_v26 = vpack.c.bf16 %v3023_v21, %v3022_v60 }
 0x83c   : > { %3703 = vmatpush3.bf16.msra.mxu0 %v2764_v22 }
 0x83d   : > { %3720 = vmatprep.subr.bf16.mxu0 %v4060_v4 }
 0x8f7   : > { %v2638_v7 = vpop.f32.mrf.mxu0 }
 0x8f8   : > { %v2639_v63 = vadd.f32 %v3441_v59, %v2638_v7 }
 0x8f9   : > { %v3690_v9 = vpop.f32.mrf.mxu0 }
 0x8fa   : > { %v2647_v15 = vmul.f32 0.70710677, %v2639_v63  ;;  %v2645_v44 = vmul.f32 0.5, %v2639_v63  ;;  %v3446_v9 = vld [vmem:[%s5011_s3] ss:$0 sm:$0xff]  ;;  %s5013_s3 = sld [smem:[#allocation32_spill]] }
 0x8fb   : > { %v2641_v56 = vpop.f32.mrf.mxu0 }
 0x8fc   : > { %3908 = verf.f32 %v2647_v15  ;;  %v2642_v25 = vadd.f32 %v3441_v59, %v2641_v56  ;;  %v2886_v56 = vld [vmem:[%s5012_s5 + $0x30] sm:$0xff] }
 0x8fd   : > { %v3691_v41 = vpop.f32.mrf.mxu0 }
 0x8fe   : > { %v2648_v42 = vmul.f32 0.70710677, %v2642_v25  ;;  %v2646_v49 = vmul.f32 0.5, %v2642_v25  ;;  %v2887_v25 = vld [vmem:[%s5012_s5 + $0x38] sm:$0xff] }
 0x900   : > { %3910 = verf.f32 %v2648_v42  ;;  %v2945_v46 = vld [vmem:[%s5013_s3 + $0x10] sm:$0xff]  ;;  %v2946_v29 = vld [vmem:[%s5013_s3 + $0x18] sm:$0xff]  ;;  %v2943_v53 = vld [vmem:[%s5013_s3] sm:$0xff] }
 0x901   : > { %v2952_v22 = vpack.c.bf16 %v2946_v29, %v2945_v46 }
 0x909   : > { %v3909_v52 = vpop.eup %3908 }
 0x90a   : > { %v2651_v3 = vadd.f32 1.0, %v3909_v52  ;;  %v2891_v52 = vpack.c.bf16 %v2887_v25, %v2886_v56 }
 0x90c   : > { %v2653_v10 = vmul.f32 %v2651_v3, %v2645_v44  ;;  %v2885_v44 = vld [vmem:[%s5012_s5 + $0x28] sm:$0xff] }
 0x90d   : > { %v3911_v5 = vpop.eup %3910 }
 0x90e   : > { %v2652_v0 = vadd.f32 1.0, %v3911_v5  ;;  %v2884_v5 = vld [vmem:[%s5012_s5 + $0x20] sm:$0xff] }
 0x910   : > { %v2654_v33 = vmul.f32 %v2652_v0, %v2646_v49  ;;  %v2890_v49 = vpack.c.bf16 %v2885_v44, %v2884_v5  ;;  %v2882_v0 = vld [vmem:[%s5012_s5 + $0x10] sm:$0xff] }
 0x912   : > { %v2659_v16 = vpack.c.bf16 %v2654_v33, %v2653_v10  ;;  %v2883_v10 = vld [vmem:[%s5012_s5 + $0x18] sm:$0xff] }
 0x913   : > { %v2889_v33 = vpack.c.bf16 %v2883_v10, %v2882_v0 }
 0x914   : > { %3697 = vmatmul.mubr.msk.bf16.vlgmr.msra.gmra.mxu1 %vm1393_vm6, %v2659_v16  ;;  %v2813_v16 = vld [vmem:[%s5009_s15] sm:$0xff] }
 0x915   : > { %3716 = vmatprep.mubr.msk.bf16.mxu1 %vm4061_vm1, %v4060_v4  ;;  %3709 = vmatpush3.bf16.msra.mxu1 %v2825_v31  ;;  %v2944_v31 = vld [vmem:[%s5013_s3 + $0x8] sm:$0xff] }
 0x916   : > { %3710 = vmatprep.subr.bf16.mxu1 %v4060_v4 }
 0x919   : > { %3711 = vmatpush3.bf16.msra.mxu1 %v2824_v6  ;;  %v2951_v6 = vpack.c.bf16 %v2944_v31, %v2943_v53 }
 0x91a   : > { %3712 = vmatprep.subr.bf16.mxu1 %v4060_v4 }
 0x91d   : > { %3713 = vmatpush3.bf16.msra.mxu1 %v2823_v34  ;;  %v3450_v34 = vld [vmem:[#allocation2] ss:$0 sm:$0xff] }
 0x91e   : > { %3714 = vmatprep.subr.bf16.mxu1 %v4060_v4 }
 0x9d4   : > { %v2706_v40 = vpop.f32.mrf.mxu1 }
 0x9d5   : > { %v2707_v36 = vadd.f32 %v3443_v24, %v2706_v40  ;;  %v2880_v40 = vld [vmem:[%s5012_s5] sm:$0xff] }
 0x9d6   : > { %v3698_v50 = vpop.f32.mrf.mxu1 }
 0x9d7   : > { %v2713_v13 = vadd.f32 %v2707_v36, %v2585_v28  ;;  %v2881_v50 = vld [vmem:[%s5012_s5 + $0x8] sm:$0xff]  ;;  %s4801_s5 = scalar_lea.vmem [#allocation3], %s4955_s9  ;;  %s5015_s9 = sld [smem:[#allocation30_spill]] }
 0x9d8   : > { %v2709_v1 = vpop.f32.mrf.mxu1 }
 0x9d9   : > { %v2710_v11 = vadd.f32 %v3443_v24, %v2709_v1  ;;  %v2717_v17 = vsel %vm1393_vm6, %v2713_v13, 0.0  ;;  %v2814_v24 = vld [vmem:[%s5009_s15 + $0x8] sm:$0xff]  ;;  %s3936_s15 = sshll.u32 %s4062_s14, 4  ;;  %s3937_s15 = int_to_ptr.vmem [resolvable:$false] %s3936_s15 }
 0x9da   : > { %2718 = vadd.xlane.f32.xlu0 %v2717_v17  ;;  %v3699_v55 = vpop.f32.mrf.mxu1  ;;  %v2822_v36 = vpack.c.bf16 %v2814_v24, %v2813_v16  ;;  %v2950_v17 = vld [vmem:[%s5013_s3 + $0x38] sm:$0xff] }
 0x9db   : > { %v2714_v8 = vadd.f32 %v2710_v11, %v2586_v35  ;;  %v2949_v11 = vld [vmem:[%s5013_s3 + $0x30] sm:$0xff] }
 0x9dc   : > { %3715 = vmatpush3.bf16.msra.mxu1 %v2822_v36  ;;  %v3026_v55 = vld [vmem:[%s5014_s16 + $0x30] sm:$0xff] }
 0x9dd   : > { %v2720_v61 = vsel %vm1393_vm6, %v2714_v8, 0.0  ;;  %3732 = vmatprep.subr.bf16.mxu1 %v4060_v4  ;;  %v3448_v57 = vld [vmem:[%s5015_s9] ss:$0 sm:$0xff]  ;;  %s3131_s9 = sshll.u32 %s4801_s5, 4  ;;  %s4855_s9 = int_to_ptr.vmem [resolvable:$true] %s3131_s9 }
 0x9de   : > { %2721 = vadd.xlane.f32.xlu1 %v2720_v61  ;;  %s3932_s13 = scalar_lea.vmem %s4855_s9, 256  ;;  %p3939_p0 = scmp.lt.s32.totalorder %s4855_s9, %s3937_s15 }
 0x9df   : > { %p3933_p11 = scmp.ne.s32.totalorder %s4855_s9, %s3932_s13 }
 0x9e1   : > { %p3934_p12 = pnand %p3933_p11, %p4292_p5 }
 0x9e3   : > { %p3935_p13 = pneg %p3934_p12 }
 0xa63   : > { %v2719_v51 = vpop.xlane.xlu0 %2718 }
 0xa64   : > { %v2723_v27 = vmul.f32 0.03125, %v2719_v51 }
 0xa66   : > { %v2725_v2 = vsub.f32 %v2713_v13, %v2723_v27  ;;  %v2888_v13 = vpack.c.bf16 %v2881_v50, %v2880_v40  ;;  %v2954_v27 = vpack.c.bf16 %v2950_v17, %v2949_v11 }
 0xa67   : > { %v2722_v14 = vpop.xlane.xlu1 %2721 }
 0xa68   : > { %v2724_v18 = vmul.f32 0.03125, %v2722_v14  ;;  %v2727_v62 = vmul.f32 %v2725_v2, %v2725_v2  ;;  %v2947_v14 = vld [vmem:[%s5013_s3 + $0x20] sm:$0xff] }
 0xa6a   : > { %v2726_v43 = vsub.f32 %v2714_v8, %v2724_v18  ;;  %v2729_v38 = vsel %vm1393_vm6, %v2727_v62, 0.0  ;;  %v3027_v8 = vld [vmem:[%s5014_s16 + $0x38] sm:$0xff]  ;;  %v2948_v62 = vld [vmem:[%s5013_s3 + $0x28] sm:$0xff]  ;;  %s1175_s3 = scalar_lea.vmem %s4237_s24, %s4315_s4 }
 0xa6b   : > { %2730 = vadd.xlane.f32.xlu0 %v2729_v38  ;;  %v3025_v38 = vld [vmem:[%s5014_s16 + $0x28] sm:$0xff] }
 0xa6c   : > { %v2728_v19 = vmul.f32 %v2726_v43, %v2726_v43 }
 0xa6e   : > { %v2732_v20 = vsel %vm1393_vm6, %v2728_v19, 0.0 }
 0xa6f   : > { %2733 = vadd.xlane.f32.xlu1 %v2732_v20  ;;  %v2953_v20 = vpack.c.bf16 %v2948_v62, %v2947_v14 }
 0xaf4   : > { %v2731_v28 = vpop.xlane.xlu0 %2730 }
 0xaf5   : > { %v2735_v35 = vmul.f32 0.03125, %v2731_v28 }
 0xaf7   : > { %v2737_v45 = vadd.f32 1e-05, %v2735_v35 }
 0xaf8   : > { %v2734_v47 = vpop.xlane.xlu1 %2733 }
 0xaf9   : > { %3912 = vrsqrt.f32 %v2737_v45  ;;  %v2736_v54 = vmul.f32 0.03125, %v2734_v47 }
 0xafb   : > { %v2738_v48 = vadd.f32 1e-05, %v2736_v54 }
 0xafd   : > { %3914 = vrsqrt.f32 %v2738_v48 }
 0xb06   : > { %v3913_v58 = vpop.eup %3912 }
 0xb07   : > { %v2741_v32 = vmul.f32 %v3913_v58, %v2725_v2  ;;  %v3031_v2 = vpack.c.bf16 %v3027_v8, %v3026_v55 }
 0xb09   : > { %v2749_v63 = vmul.f32 %v3445_v39, %v2741_v32 }
 0xb0a   : > { %v3915_v59 = vpop.eup %3914 }
 0xb0b   : > { %v2742_v7 = vmul.f32 %v3915_v59, %v2726_v43  ;;  %v2757_v41 = vadd.f32 %v3446_v9, %v2749_v63  ;;  %v3024_v43 = vld [vmem:[%s5014_s16 + $0x20] sm:$0xff]  ;;  %s3938_s16 = scalar_lea.vmem %s3937_s15, 512 }
 0xb0c   : > { %v3030_v23 = vpack.c.bf16 %v3025_v38, %v3024_v43  ;;  %p3940_p1 = scmp.lt.s32.totalorder %s3938_s16, %s3932_s13 }
 0xb0d   : > { %v2750_v15 = vmul.f32 %v3445_v39, %v2742_v7 }
 0xb0e   : > { %p3941_p2 = por %p3940_p1, %p3939_p0 }
 0xb0f   : > { %v2758_v42 = vadd.f32 %v3446_v9, %v2750_v15 }
 0xb10   : > { %p3942_p3 = pnand %p3941_p2, %p3935_p13 }
 0xb11   : > { %v2763_v3 = vpack.c.bf16 %v2758_v42, %v2757_v41 }
 0xb13   : > { %3705 = vmatmul.mubr.msk.bf16.vlgmr.msra.gmra.mxu0 %vm1393_vm6, %v2763_v3 }
 0xb14   : > { %3721 = vmatpush3.bf16.msra.mxu0 %v2891_v52  ;;  %3728 = vmatprep.mubr.msk.bf16.mxu0 %vm4061_vm1, %v4060_v4 }
 0xb15   : > { %3722 = vmatprep.subr.bf16.mxu0 %v4060_v4 }
 0xb18   : > { %3723 = vmatpush3.bf16.msra.mxu0 %v2890_v49 }
 0xb19   : > { %3724 = vmatprep.subr.bf16.mxu0 %v4060_v4 }
 0xb1c   : > { %3725 = vmatpush3.bf16.msra.mxu0 %v2889_v33 }
 0xb1d   : > { %3726 = vmatprep.subr.bf16.mxu0 %v4060_v4 }
 0xb20   : > { %3727 = vmatpush3.bf16.msra.mxu0 %v2888_v13 }
 0xb21   : > { %3744 = vmatprep.subr.bf16.mxu0 %v4060_v4 }
 0xbd3   : > { %v2803_v1 = vpop.f32.mrf.mxu0 }
 0xbd4   : > { %2811 = vst.msk [vmem:[%s4801_s5] sm:$0xff] %vm2810_vm7, %v2803_v1 }
 0xbd5   : > { %v3706_v61 = vpop.f32.mrf.mxu0 }
 0xbd7   : > { %v2806_v51 = vpop.f32.mrf.mxu0 }
 0xbd8   : > { %2812 = vst.msk [vmem:[%s4801_s5 + $0x8] sm:$0xff] %vm2810_vm7, %v2806_v51  ;;  %v2821_v18 = vpack.c.bf16 %v2806_v51, %v2803_v1 }
 0xbd9   : > { %v3707_v19 = vpop.f32.mrf.mxu0 }
 0xbda   : > { %3717 = vmatmul.mubr.msk.bf16.vlgmr.msra.gmra.mxu1 %vm2810_vm7, %v2821_v18  ;;  %3729 = vmatmul.mubr.msk.bf16.vlgmr.msra.gmra.mxu0 %vm2810_vm7, %v2821_v18 }
 0xbdb   : > { %3733 = vmatpush3.bf16.msra.mxu1 %v2954_v27  ;;  %3745 = vmatpush3.bf16.msra.mxu0 %v3031_v2 }
 0xbdc   : > { %3734 = vmatprep.subr.bf16.mxu1 %v4060_v4  ;;  %3746 = vmatprep.subr.bf16.mxu0 %v4060_v4 }
 0xbdd   : > { %3740 = vmatprep.mubr.msk.bf16.mxu1 %vm4061_vm1, %v4060_v4  ;;  %3752 = vmatprep.mubr.msk.bf16.mxu0 %vm4061_vm1, %v4060_v4 }
 0xbdf   : > { %3735 = vmatpush3.bf16.msra.mxu1 %v2953_v20  ;;  %3747 = vmatpush3.bf16.msra.mxu0 %v3030_v23 }
 0xbe0   : > { %3736 = vmatprep.subr.bf16.mxu1 %v4060_v4  ;;  %3748 = vmatprep.subr.bf16.mxu0 %v4060_v4 }
 0xbe3   : > { %3737 = vmatpush3.bf16.msra.mxu1 %v2952_v22  ;;  %3749 = vmatpush3.bf16.msra.mxu0 %v3029_v26 }
 0xbe4   : > { %3738 = vmatprep.subr.bf16.mxu1 %v4060_v4  ;;  %3750 = vmatprep.subr.bf16.mxu0 %v4060_v4 }
 0xbe7   : > { %3739 = vmatpush3.bf16.msra.mxu1 %v2951_v6  ;;  %3751 = vmatpush3.bf16.msra.mxu0 %v3028_v30 }
 0xbea   : > { %3741 = vmatmul.mubr.msk.bf16.vlgmr.msra.gmra.mxu1 %vm2810_vm7, %v2821_v18  ;;  %3753 = vmatmul.mubr.msk.bf16.vlgmr.msra.gmra.mxu0 %vm2810_vm7, %v2821_v18 }
 0xc9a   : > { %v2870_v28 = vpop.f32.mrf.mxu1  ;;  %v2933_v35 = vpop.f32.mrf.mxu0 }
 0xc9b   : > { %v2871_v45 = vadd.f32 %v3448_v57, %v2870_v28  ;;  %v2934_v47 = vadd.f32 %v3450_v34, %v2933_v35 }
 0xc9c   : > { %v3718_v54 = vpop.f32.mrf.mxu1  ;;  %v3730_v48 = vpop.f32.mrf.mxu0 }
 0xc9d   : > { %2878 = vst.msk [vmem:[%s1175_s3] sm:$0xff] %vm2877_vm8, %v2871_v45 }
 0xc9e   : > { %2941 = vst.msk [vmem:[%s1180_s12] sm:$0xff] %vm2940_vm9, %v2934_v47  ;;  %v2873_v4 = vpop.f32.mrf.mxu1  ;;  %v2936_v58 = vpop.f32.mrf.mxu0 }
 0xc9f   : > { %v2874_v32 = vadd.f32 %v3448_v57, %v2873_v4  ;;  %v2937_v39 = vadd.f32 %v3450_v34, %v2936_v58 }
 0xca0   : > { %v3719_v59 = vpop.f32.mrf.mxu1  ;;  %v3731_v7 = vpop.f32.mrf.mxu0 }
 0xca1   : > { %2879 = vst.msk [vmem:[%s1175_s3 + $0x8] sm:$0xff] %vm2877_vm8, %v2874_v32 }
 0xca2   : > { %2942 = vst.msk [vmem:[%s1180_s12 + $0x8] sm:$0xff] %vm2940_vm9, %v2937_v39  ;;  %s4960_s12 = sshll.u32 %s4275_s0, 8 }
 0xca3   : > { %s4861_s3 = scalar_lea.hbm %s4232_s27, %s4960_s12 }
 0xcaa   : > { %v2989_v63 = vpop.f32.mrf.mxu1  ;;  %v3066_v9 = vpop.f32.mrf.mxu0 }
 0xcab   : > { %v2996_v15 = vsel %vm1254_vm4, %v2989_v63, -inf  ;;  %v3073_v3 = vsel %vm1315_vm5, %v3066_v9, -inf }
 0xcac   : > { %2997 = vmax.xlane.f32.xlu0 %v2996_v15  ;;  %v3742_v56 = vpop.f32.mrf.mxu1  ;;  %v3754_v25 = vpop.f32.mrf.mxu0 }
 0xcae   : > { %v2992_v41 = vpop.f32.mrf.mxu1  ;;  %v3069_v42 = vpop.f32.mrf.mxu0 }
 0xcaf   : > { %v2999_v52 = vsel %vm1254_vm4, %v2992_v41, -inf  ;;  %v3076_v49 = vsel %vm1315_vm5, %v3069_v42, -inf }
 0xcb0   : > { %3000 = vmax.xlane.f32.xlu1 %v2999_v52  ;;  %v3743_v5 = vpop.f32.mrf.mxu1  ;;  %3074 = vmax.xlane.f32.xlu0 %v3073_v3  ;;  %v3755_v44 = vpop.f32.mrf.mxu0 }
 0xcb4   : > { %3077 = vmax.xlane.f32.xlu1 %v3076_v49 }
 0xd35   : > { %v2998_v0 = vpop.xlane.xlu0 %2997 }
 0xd36   : > { %v3002_v10 = vsub.f32 %v2989_v63, %v2998_v0 }
 0xd38   : > { %v3004_v33 = vmul.f32 1.442695, %v3002_v10 }
 0xd39   : > { %v3001_v16 = vpop.xlane.xlu1 %3000  ;;  %v3075_v24 = vpop.xlane.xlu0 %3074 }
 0xd3a   : > { %3916 = vpow2.f32 %v3004_v33  ;;  %v3003_v40 = vsub.f32 %v2992_v41, %v3001_v16  ;;  %v3079_v36 = vsub.f32 %v3066_v9, %v3075_v24 }
 0xd3c   : > { %v3006_v50 = vmul.f32 1.442695, %v3003_v40  ;;  %v3081_v13 = vmul.f32 1.442695, %v3079_v36 }
 0xd3d   : > { %v3078_v1 = vpop.xlane.xlu1 %3077 }
 0xd3e   : > { %3918 = vpow2.f32 %v3006_v50  ;;  %v3080_v11 = vsub.f32 %v3069_v42, %v3078_v1 }
 0xd3f   : > { %3920 = vpow2.f32 %v3081_v13 }
 0xd40   : > { %v3083_v17 = vmul.f32 1.442695, %v3080_v11 }
 0xd42   : > { %3922 = vpow2.f32 %v3083_v17 }
 0xd47   : > { %v3917_v55 = vpop.eup %3916 }
 0xd48   : > { %v3008_v8 = vsel %vm1254_vm4, %v3917_v55, 0.0 }
 0xd49   : > { %3009 = vadd.xlane.f32.xlu0 %v3008_v8 }
 0xd4b   : > { %v3919_v61 = vpop.eup %3918 }
 0xd4c   : > { %v3921_v51 = vpop.eup %3920  ;;  %v3011_v27 = vsel %vm1254_vm4, %v3919_v61, 0.0 }
 0xd4d   : > { %v3085_v2 = vsel %vm1315_vm5, %v3921_v51, 0.0  ;;  %3012 = vadd.xlane.f32.xlu1 %v3011_v27 }
 0xd4e   : > { %3086 = vadd.xlane.f32.xlu0 %v3085_v2 }
 0xd4f   : > { %v4850_v14 = vpop.eup %3922 }
 0xd50   : > { %v3088_v18 = vsel %vm1315_vm5, %v4850_v14, 0.0 }
 0xd51   : > { %3089 = vadd.xlane.f32.xlu1 %v3088_v18 }
 0xd52   : > { %3945 = shalt.err (!%p3942_p3)
}
 0xd53   : > { %s3946_s5 = scalar_lea.hbm %s4861_s3, 256  ;;  %s3950_s12 = scalar_lea.hbm %s4232_s27, 512 }
 0xd54   : > { %p3947_p4 = scmp.ne.s32.totalorder %s4861_s3, %s3946_s5  ;;  %p3951_p9 = scmp.lt.s32.totalorder %s4861_s3, %s4232_s27 }
 0xd55   : > { %p3952_p10 = scmp.lt.s32.totalorder %s3950_s12, %s3946_s5 }
 0xd56   : > { %p3948_p7 = pnand %p3947_p4, %p4292_p5 }
 0xd57   : > { %p3953_p11 = por %p3952_p10, %p3951_p9 }
 0xd58   : > { %p3949_p8 = pneg %p3948_p7 }
 0xd5a   : > { %p3954_p12 = pnand %p3953_p11, %p3949_p8 }
 0xd5c   : > { %3957 = shalt.err (!%p3954_p12)
}
 0xd5d   : > { %s4961_s13 = smov 128   ;;  %s4962_s14 = smov 8  }
 0xd5e   : > { %3756 = dma.vmem_to_hbm [thread:$0]  (%p4292_p5), %s4855_s9, 256, %s4861_s3, %s3098_s6, %s4961_s13, %s4961_s13, %s4962_s14  }
 0xd5f   : > { %s5017_s15 = sshll.u32 %s4795_s8, 4  ;;  %s4892_s6 = scalar_lea.vmem %s4252_s28, %s4315_s4 }
 0xd60   : > { %s1148_s16 = scalar_lea.vmem [#allocation5], %s5017_s15  ;;  %s5018_s9 = sshll.u32 %s4275_s0, 8 }
 0xd61   : > { %s3153_s12 = sshll.u32 %s1148_s16, 4  ;;  %s4897_s3 = scalar_lea.hbm %s4247_s20, %s5018_s9  ;;  %s4888_s12 = int_to_ptr.vmem [resolvable:$true] %s3153_s12 }
 0xd62   : > { %s3113_s5 = scalar_lea.sflag [#allocation6], %s4795_s8  ;;  %s3958_s15 = scalar_lea.vmem %s4888_s12, 256 }
 0xd63   : > { %p3959_p13 = scmp.ne.s32.totalorder %s4888_s12, %s3958_s15  ;;  %s4065_s4 = smov [#allocation5]  }
 0xd64   : > { %s3962_s13 = sshll.u32 %s4065_s4, 4  ;;  %s3963_s13 = int_to_ptr.vmem [resolvable:$false] %s3962_s13 }
 0xd65   : > { %p3960_p0 = pnand %p3959_p13, %p4292_p5  ;;  %s3964_s14 = scalar_lea.vmem %s3963_s13, 512 }
 0xd66   : > { %p3965_p2 = scmp.lt.s32.totalorder %s4888_s12, %s3963_s13  ;;  %p3966_p3 = scmp.lt.s32.totalorder %s3964_s14, %s3958_s15 }
 0xd67   : > { %p3961_p1 = pneg %p3960_p0 }
 0xd68   : > { %p3967_p4 = por %p3966_p3, %p3965_p2 }
 0xd6a   : > { %p3968_p7 = pnand %p3967_p4, %p3961_p1 }
 0xdd2   : > { %v3010_v62 = vpop.xlane.xlu0 %3009 }
 0xdd3   : > { %3924 = vrcp.f32 %v3010_v62 }
 0xdd6   : > { %v3013_v43 = vpop.xlane.xlu1 %3012 }
 0xdd7   : > { %v3087_v38 = vpop.xlane.xlu0 %3086  ;;  %3926 = vrcp.f32 %v3013_v43 }
 0xdd8   : > { %3928 = vrcp.f32 %v3087_v38 }
 0xdda   : > { %v3090_v19 = vpop.xlane.xlu1 %3089 }
 0xddb   : > { %3930 = vrcp.f32 %v3090_v19 }
 0xde0   : > { %v3925_v20 = vpop.eup %3924 }
 0xde1   : > { %v3016_v23 = vmul.f32 %v3925_v20, %v3917_v55 }
 0xde3   : > { %3018 = vst.msk [vmem:[%s1148_s16] sm:$0xff] %vm1254_vm4, %v3016_v23 }
 0xde4   : > { %v3927_v46 = vpop.eup %3926 }
 0xde5   : > { %v3929_v29 = vpop.eup %3928  ;;  %v3017_v60 = vmul.f32 %v3927_v46, %v3919_v61 }
 0xde6   : > { %v3093_v21 = vmul.f32 %v3929_v29, %v3921_v51 }
 0xde7   : > { %3019 = vst.msk [vmem:[%s1148_s16 + $0x8] sm:$0xff] %vm1254_vm4, %v3017_v60 }
 0xde8   : > { %v3931_v22 = vpop.eup %3930  ;;  %3095 = vst.msk [vmem:[%s4892_s6] sm:$0xff] %vm1315_vm5, %v3093_v21 }
 0xde9   : > { %3971 = shalt.err (!%p3968_p7)
}
 0xdea   : > { %s3972_s8 = scalar_lea.hbm %s4897_s3, 256  ;;  %s3976_s0 = scalar_lea.hbm %s4247_s20, 512 }
 0xdeb   : > { %p3973_p8 = scmp.ne.s32.totalorder %s4897_s3, %s3972_s8  ;;  %p3977_p11 = scmp.lt.s32.totalorder %s4897_s3, %s4247_s20 }
 0xdec   : > { %p3978_p12 = scmp.lt.s32.totalorder %s3976_s0, %s3972_s8 }
 0xded   : > { %p3974_p9 = pnand %p3973_p8, %p4292_p5 }
 0xdee   : > { %p3979_p13 = por %p3978_p12, %p3977_p11 }
 0xdef   : > { %p3975_p10 = pneg %p3974_p9 }
 0xdf1   : > { %p3980_p0 = pnand %p3979_p13, %p3975_p10 }
 0xdf3   : > { %3983 = shalt.err (!%p3980_p0)
}
 0xdf4   : > { %s5019_s13 = smov 8   ;;  %s5020_s14 = smov 128   ;;  %v3094_v26 = vmul.f32 %v3931_v22, %v4850_v14 }
 0xdf5   : > { %3757 = dma.vmem_to_hbm [thread:$0]  (%p4292_p5), %s4888_s12, 256, %s4897_s3, %s3113_s5, %s5020_s14, %s5020_s14, %s5019_s13  }
 0xdf6   : > { %3096 = vst.msk [vmem:[%s4892_s6 + $0x8] sm:$0xff] %vm1315_vm5, %v3094_v26 }
 0xdf7 PF: > { %p3767_p1 = scmp.ge.s32.totalorder %s4022_s7, 2  ;;  %s3171_s16 = sand.u32 1, %s4010_s1  }
 0xdf8   : > { %s3172_s23 = scalar_lea.sflag [#allocation4], %s3171_s16 }
 0xdf9   : > { %p3761_p2 = pnand %p3767_p1, %p4296_p6 }
 0xdfb   : > { %p3762_p3 = pneg %p3761_p2 }
 0xdfd   : > { %4001 = dma.done.wait (%p3762_p3), %s3172_s23, 256  }
 0xdfe   : > { %4003 = vsyncadd (%p3762_p3), %s3172_s23, 4294967040  ;;  %s3197_s9 = scalar_lea.sflag [#allocation6], %s3171_s16 }
 0xdff   : > { %4005 = dma.done.wait (%p3762_p3), %s3197_s9, 256  }
 0xe00   : > { %4007 = vsyncadd (%p3762_p3), %s3197_s9, 4294967040  ;;  %p89_p5 = scmp.ge.s32.totalorder %s4279_s11, 4   ;;  %s5021_s1 = smov %s4014_s2 }
 0xe01   : > { %s5022_s2 = smov %s4018_s10  ;;  %s5023_s10 = smov %s4290_s18 }
 0xe02   : > { %s5024_s7 = smov %s4279_s11  ;;  %91 = sbr.rel (!%p89_p5) target bundleno = 75 (0x4b), region = 278 }
 0xe07   :  { %3210 = vsyncpa [#allocation4], 1 }
 0xe08   :  { %3212 = vsyncpa [#allocation4 + $0x1], 1 }
 0xe09   :  { %3213 = vsyncpa [#allocation6], 1 }
 0xe0a   :  { %3215 = vsyncpa [#allocation6 + $0x1], 1 }

</bundles_post_ra>
